<compile_context>
chip_gen: v7x
topology: tpu7x:2x2x1
jax: 0.10.0
libtpu: 0.0.40
codegen_flags: <defaults>
</compile_context>

<pallas_src>
import functools

import jax
import jax.numpy as jnp
from jax.experimental import pallas as pl
from jax.experimental.pallas import tpu as pltpu

EPS = 1e-5
LANE = 128
TM_MM = 512                       # M tile for the fused-matmul kernels
TM_CONV3 = 512                    # M tile for the direct 3x3 conv kernel
MM_VMEM_BUDGET = 24 * 1024 * 1024  # target working set per matmul pallas_call


def _round_up(x, m):
    return (x + m - 1) // m * m


def _pad_c(c):
    return _round_up(c, LANE)


def _compiler_params(semantics, est_bytes):
    # Raise the scoped-VMEM limit to cover the estimated working set, capped so a
    # plan that fits v5e/v6e (128 MiB VMEM) cannot exceed v7x's 64 MiB physical.
    limit = int(min(40 * 1024 * 1024, max(24 * 1024 * 1024, 2 * est_bytes)))
    return pltpu.CompilerParams(dimension_semantics=semantics,
                                vmem_limit_bytes=limit)


# ----------------------------- Pallas kernels ------------------------------

def _mm_kernel(x_ref, w_ref, b_ref, o_ref, *, relu):
    """out = [relu](x @ w + b)."""
    acc = jnp.dot(x_ref[...], w_ref[...], preferred_element_type=jnp.float32)
    acc = acc + b_ref[...]
    if relu:
        acc = jnp.maximum(acc, 0.0)
    o_ref[...] = acc.astype(o_ref.dtype)


def _mm_res_kernel(x_ref, w_ref, b_ref, r_ref, o_ref, *, relu):
    """out = [relu](x @ w + b + residual)."""
    acc = jnp.dot(x_ref[...], w_ref[...], preferred_element_type=jnp.float32)
    acc = acc + b_ref[...] + r_ref[...].astype(jnp.float32)
    if relu:
        acc = jnp.maximum(acc, 0.0)
    o_ref[...] = acc.astype(o_ref.dtype)


def _mm_dual_kernel(x_ref, w_ref, xb_ref, wb_ref, b_ref, o_ref, *, relu):
    """out = [relu](x @ w + xb @ wb + b)   (conv3 + fused downsample path)."""
    acc = jnp.dot(x_ref[...], w_ref[...], preferred_element_type=jnp.float32)
    acc = acc + jnp.dot(xb_ref[...], wb_ref[...],
                        preferred_element_type=jnp.float32)
    acc = acc + b_ref[...]
    if relu:
        acc = jnp.maximum(acc, 0.0)
    o_ref[...] = acc.astype(o_ref.dtype)


def _conv3x3_direct_kernel(x_hbm, w_ref, b_ref, o_ref, buf_ref, sem_ref, *,
                           tap_offsets, tm, rows, relu):
    """Direct 3x3 conv on a per-image flattened padded canvas.

    x_hbm   : [N, m_pad + halo, Cp] bf16 in HBM (manual double-buffered DMA).
    w_ref   : [9, Cp, Coutp] bf16 (resident; constant block index).
    b_ref   : [1, Coutp] f32 folded BN bias.
    o_ref   : [tm, Coutp] bf16 output tile.
    buf_ref : VMEM [2, rows, Cp]   sem_ref: DMA sems [2].
    """
    bi = pl.program_id(0)          # image (parallel; megacore-splittable on v7x)
    mi = pl.program_id(1)          # row tile within the image (sequential)
    nm = pl.num_programs(1)
    slot = mi % 2

    def _copy(step, slot_):
        return pltpu.make_async_copy(
            x_hbm.at[bi, pl.ds(step * tm, rows), :],
            buf_ref.at[slot_], sem_ref.at[slot_])

    @pl.when(mi == 0)
    def _():
        _copy(0, 0).start()                       # prime this image's pipeline

    @pl.when(mi + 1 < nm)
    def _():
        _copy(mi + 1, 1 - slot).start()           # prefetch next row tile

    # Wait with the exact same {src slice, dst, sem} descriptor that was started.
    _copy(mi, slot).wait()

    cur = buf_ref.at[slot]
    acc = jnp.dot(cur[pl.ds(tap_offsets[0], tm), :], w_ref[0],
                  preferred_element_type=jnp.float32)
    for t in range(1, len(tap_offsets)):
        acc = acc + jnp.dot(cur[pl.ds(tap_offsets[t], tm), :], w_ref[t],
                            preferred_element_type=jnp.float32)
    acc = acc + b_ref[...]
    if relu:
        acc = jnp.maximum(acc, 0.0)
    o_ref[...] = acc.astype(o_ref.dtype)


def _avgpool_kernel(x_ref, o_ref, *, s, wo, inv):
    """x_ref: [t, s*wo*s, c] (s*s window, rows grouped) -> o_ref: [t, wo, c]."""
    t, _, c = x_ref.shape
    x = x_ref[...].astype(jnp.float32)
    x = jnp.sum(x.reshape(t, s, wo * s, c), axis=1)     # vertical window sum
    x = jnp.sum(x.reshape(t, wo, s, c), axis=2)         # horizontal window sum
    o_ref[...] = (x * inv).astype(o_ref.dtype)


# ------------------------------ op wrappers ---------------------------------

def _mm_vmem_bytes(tm, tn, k, kb, has_res):
    by = 2 * tm * k * 2            # x tile (bf16), double-buffered
    by += 2 * k * tn * 2           # weight tile (2 pipeline buffers even if resident)
    by += 2 * tm * tn * 2          # output tile
    by += 2 * tn * 4 * 2           # bias (f32)
    if kb:
        by += 2 * tm * kb * 2 + 2 * kb * tn * 2
    if has_res:
        by += 2 * tm * tn * 2
    return by


def _choose_mm_tiles(m, k, coutp, kb, has_res):
    tm = TM_MM if m >= TM_MM else _round_up(m, 8)
    # Largest N tile first: tn == coutp keeps the weight block index constant so
    # W stays VMEM-resident over the whole M sweep (no per-tile weight re-DMA).
    cands = [coutp] + [c for c in (512, 256, 128) if c < coutp and coutp % c == 0]
    for tn in cands:
        if _mm_vmem_bytes(tm, tn, k, kb, has_res) <= MM_VMEM_BUDGET:
            return tm, tn
    tn = cands[-1]
    while tm > 8 and _mm_vmem_bytes(tm, tn, k, kb, has_res) > MM_VMEM_BUDGET:
        tm = max(8, _round_up(tm // 2, 8))
    return tm, tn


def matmul_bn(x2, w2, bias, *, relu=True, residual=None, x2b=None, w2b=None):
    """Fused  out = [relu](x2 @ w2 [+ x2b @ w2b] [+ residual] + bias).

    x2: [M, K] bf16, w2: [K, Coutp] bf16, bias: [1, Coutp] f32.
    Returns [M, Coutp] bf16.
    """
    m, k = x2.shape
    coutp = w2.shape[1]
    kb = x2b.shape[1] if x2b is not None else 0
    tm, tn = _choose_mm_tiles(m, k, coutp, kb, residual is not None)
    m_pad = _round_up(m, tm)
    pad_m = m_pad - m
    if pad_m:
        x2 = jnp.pad(x2, ((0, pad_m), (0, 0)))

    args = [x2, w2]
    in_specs = [pl.BlockSpec((tm, k), lambda i, j: (i, 0)),
                pl.BlockSpec((k, tn), lambda i, j: (0, j))]

    if x2b is not None:
        if pad_m:
            x2b = jnp.pad(x2b, ((0, pad_m), (0, 0)))
        args += [x2b, w2b]
        in_specs += [pl.BlockSpec((tm, kb), lambda i, j: (i, 0)),
                     pl.BlockSpec((kb, tn), lambda i, j: (0, j))]

    args.append(bias)
    in_specs.append(pl.BlockSpec((1, tn), lambda i, j: (0, j)))

    if residual is not None:
        if pad_m:
            residual = jnp.pad(residual, ((0, pad_m), (0, 0)))
        args.append(residual)
        in_specs.append(pl.BlockSpec((tm, tn), lambda i, j: (i, j)))
        kernel = functools.partial(_mm_res_kernel, relu=relu)
    elif x2b is not None:
        kernel = functools.partial(_mm_dual_kernel, relu=relu)
    else:
        kernel = functools.partial(_mm_kernel, relu=relu)

    est = _mm_vmem_bytes(tm, tn, k, kb, residual is not None)
    out = pl.pallas_call(
        kernel,
        out_shape=jax.ShapeDtypeStruct((m_pad, coutp), jnp.bfloat16),
        grid=(m_pad // tm, coutp // tn),
        in_specs=in_specs,
        out_specs=pl.BlockSpec((tm, tn), lambda i, j: (i, j)),
        compiler_params=_compiler_params(("parallel", "parallel"), est),
    )(*args)
    return out[:m]


def conv3x3_direct_bn(x, w_taps, bias, *, dilation=1, relu=True):
    """Direct stride-1 3x3 conv + folded BN (+ReLU) for Cin >= 128 layers.

    x: [N, H, W, Cp] bf16, w_taps: [9, Cp, Coutp] bf16 (tap = ki*3 + kj),
    bias: [1, Coutp] f32.  Returns [N, H, W, Coutp] bf16.
    """
    n, h, w_, cp = x.shape
    taps, _, coutp = w_taps.shape
    d = dilation
    pad = d                                          # 'same' padding for k=3
    hp = h + 2 * pad
    wp = _round_up(w_ + 2 * pad, 8)                  # sublane-align row pitch / taps
    xp = jnp.pad(x, ((0, 0), (pad, pad), (pad, wp - w_ - pad), (0, 0)))

    mp = hp * wp                                     # canvas rows per image
    tm = TM_CONV3 if mp >= TM_CONV3 else _round_up(mp, 8)
    m_pad = _round_up(mp, tm)
    halo = 2 * d * wp + 2 * d                        # largest tap offset
    halo_pad = _round_up(halo, 8)
    rows = tm + halo_pad                             # rows DMA'd per tile

    x_flat = xp.reshape(n, mp, cp)
    x_flat = jnp.pad(x_flat, ((0, 0), (0, m_pad - mp + halo_pad), (0, 0)))
    tap_offsets = tuple(i * d * wp + j * d for i in range(3) for j in range(3))

    est = (2 * taps * cp * coutp * 2                 # resident weights (2 buffers)
           + 2 * rows * cp * 2                       # manual double buffer
           + 2 * tm * coutp * 2)                     # output tile
    kernel = functools.partial(_conv3x3_direct_kernel, tap_offsets=tap_offsets,
                               tm=tm, rows=rows, relu=relu)
    out = pl.pallas_call(
        kernel,
        out_shape=jax.ShapeDtypeStruct((n, m_pad, coutp), jnp.bfloat16),
        grid=(n, m_pad // tm),
        in_specs=[
            pl.BlockSpec(memory_space=pl.ANY),                        # x stays in HBM
            pl.BlockSpec((taps, cp, coutp), lambda b, i: (0, 0, 0)),  # resident weights
            pl.BlockSpec((1, coutp), lambda b, i: (0, 0)),
        ],
        out_specs=pl.BlockSpec((None, tm, coutp), lambda b, i: (b, i, 0)),
        scratch_shapes=[
            pltpu.VMEM((2, rows, cp), jnp.bfloat16),                  # double buffer
            pltpu.SemaphoreType.DMA((2,)),
        ],
        # Batch axis "parallel" (safe: the manual double buffer is re-primed at
        # mi == 0 of every image segment); the row walk must stay "arbitrary".
        compiler_params=_compiler_params(("parallel", "arbitrary"), est),
    )(x_flat, w_taps, bias)

    out = out[:, :mp].reshape(n, hp, wp, coutp)
    # TODO(synk): this border crop still costs one read+write of the conv output;
    # folding it into the consumer's BlockSpec index_map would remove it.
    return out[:, :h, :w_, :]


def _extract_patches(x, kh, kw, stride, dilation, padding):
    """im2col patch extraction (taps concatenated along channels, tap-major)."""
    n, h, w, c = x.shape
    if padding > 0:
        x = jnp.pad(x, ((0, 0), (padding, padding), (padding, padding), (0, 0)))
    hp, wp = h + 2 * padding, w + 2 * padding
    eff_kh = dilation * (kh - 1) + 1
    eff_kw = dilation * (kw - 1) + 1
    ho = (hp - eff_kh) // stride + 1
    wo = (wp - eff_kw) // stride + 1
    cols = []
    for i in range(kh):
        for j in range(kw):
            sl = x[:, i * dilation:i * dilation + (ho - 1) * stride + 1:stride,
                      j * dilation:j * dilation + (wo - 1) * stride + 1:stride, :]
            cols.append(sl)
    return jnp.concatenate(cols, axis=-1), ho, wo


def conv3x3_im2col_bn(x, w_flat, bias, cin_real, *, dilation=1, relu=True):
    """Stride-1 3x3 conv for low-channel layers: im2col (K = 9*cin_real) + matmul.

    x: [N, H, W, Cp] bf16 (only the first cin_real channels are real),
    w_flat: [round_up(9*cin_real, 8), Coutp] bf16, bias: [1, Coutp] f32.
    """
    n, h, w_, cp = x.shape
    xr = x[..., :cin_real] if cin_real != cp else x
    patches, ho, wo = _extract_patches(xr, 3, 3, 1, dilation, dilation)
    k = patches.shape[-1]
    kp = w_flat.shape[0]
    p2 = patches.reshape(n * ho * wo, k)
    if kp != k:
        p2 = jnp.pad(p2, ((0, 0), (0, kp - k)))
    out = matmul_bn(p2, w_flat, bias, relu=relu)
    return out.reshape(n, ho, wo, -1)


def avg_pool(x, s):
    """AvgPool2d(kernel=s, stride=s), NHWC, floor behaviour like nn.AvgPool2d."""
    if s == 1:
        return x
    n, h, w_, c = x.shape
    ho, wo = h // s, w_ // s
    x = x[:, :ho * s, :wo * s, :]
    rows = n * ho
    xr = x.reshape(rows, s * wo * s, c)              # contiguous (free) reshape
    t = min(64, rows)
    rows_pad = _round_up(rows, t)
    if rows_pad != rows:
        xr = jnp.pad(xr, ((0, rows_pad - rows), (0, 0), (0, 0)))
    est = 2 * t * (s * wo * s) * c * 2 + 2 * t * wo * c * 2
    out = pl.pallas_call(
        functools.partial(_avgpool_kernel, s=s, wo=wo, inv=1.0 / (s * s)),
        out_shape=jax.ShapeDtypeStruct((rows_pad, wo, c), x.dtype),
        grid=(rows_pad // t,),
        in_specs=[pl.BlockSpec((t, s * wo * s, c), lambda i: (i, 0, 0))],
        out_specs=pl.BlockSpec((t, wo, c), lambda i: (i, 0, 0)),
        compiler_params=_compiler_params(("parallel",), est),
    )(xr)
    return out[:rows].reshape(n, ho, wo, c)


# --------------------------- parameter generation --------------------------

def _init_conv(key, kh, kw, cin, cout):
    fan_in = kh * kw * cin
    return jax.random.normal(key, (kh, kw, cin, cout), jnp.float32) / jnp.sqrt(
        jnp.float32(fan_in))


def _init_bn(key, c):
    """(scale, bias) of the eval-mode folded BatchNorm affine."""
    k1, k2, k3, k4 = jax.random.split(key, 4)
    gamma = 1.0 + 0.05 * jax.random.normal(k1, (c,), jnp.float32)
    beta = 0.05 * jax.random.normal(k2, (c,), jnp.float32)
    running_mean = 0.1 * jax.random.normal(k3, (c,), jnp.float32)
    running_var = jax.random.uniform(k4, (c,), jnp.float32, 0.5, 1.5)
    scale = gamma / jnp.sqrt(running_var + EPS)
    bias = beta - running_mean * scale
    return scale, bias


def _fold(w, bn):
    scale, bias = bn
    return w * scale.reshape(1, 1, 1, -1), bias


def _pack_1x1(w, bn, cinp, coutp):
    wf, b = _fold(w, bn)
    _, _, cin, cout = wf.shape
    wf = jnp.pad(wf.reshape(cin, cout), ((0, cinp - cin), (0, coutp - cout)))
    b = jnp.pad(b, (0, coutp - cout)).reshape(1, coutp).astype(jnp.float32)
    return wf.astype(jnp.bfloat16), b


def _pack_3x3_taps(w, bn, cinp, coutp):
    """Direct-path layout: [9, Cp, Coutp]."""
    wf, b = _fold(w, bn)
    kh, kw, cin, cout = wf.shape
    wf = jnp.pad(wf, ((0, 0), (0, 0), (0, cinp - cin), (0, coutp - cout)))
    wf = wf.reshape(kh * kw, cinp, coutp).astype(jnp.bfloat16)
    b = jnp.pad(b, (0, coutp - cout)).reshape(1, coutp).astype(jnp.float32)
    return wf, b


def _pack_3x3_im2col(w, bn, coutp):
    """im2col layout: [round_up(9*cin, 8), Coutp] (tap-major, channels minor)."""
    wf, b = _fold(w, bn)
    kh, kw, cin, cout = wf.shape
    k = kh * kw * cin
    kp = _round_up(k, 8)
    wf = jnp.pad(wf.reshape(k, cout), ((0, kp - k), (0, coutp - cout)))
    b = jnp.pad(b, (0, coutp - cout)).reshape(1, coutp).astype(jnp.float32)
    return wf.astype(jnp.bfloat16), b


def init_bottleneck(key, inplanes, planes, stride):
    ks = jax.random.split(key, 8)
    cinp, pp, outp = _pad_c(inplanes), _pad_c(planes), _pad_c(planes * 4)
    w1, b1 = _pack_1x1(_init_conv(ks[0], 1, 1, inplanes, planes),
                       _init_bn(ks[1], planes), cinp, pp)
    conv2_w = _init_conv(ks[2], 3, 3, planes, planes)
    bn2 = _init_bn(ks[3], planes)
    im2col = planes < LANE
    if im2col:
        w2, b2 = _pack_3x3_im2col(conv2_w, bn2, pp)
    else:
        w2, b2 = _pack_3x3_taps(conv2_w, bn2, pp, pp)
    w3, b3 = _pack_1x1(_init_conv(ks[4], 1, 1, planes, planes * 4),
                       _init_bn(ks[5], planes * 4), pp, outp)
    p = {"w1": w1, "b1": b1, "w2": w2, "b2": b2, "w3": w3, "b3": b3,
         "im2col": im2col, "planes": planes}
    if stride > 1 or inplanes != planes * 4:
        wd, bd = _pack_1x1(_init_conv(ks[6], 1, 1, inplanes, planes * 4),
                           _init_bn(ks[7], planes * 4), cinp, outp)
        p["wd"] = wd
        p["b3"] = b3 + bd        # combined epilogue bias for the fused dual matmul
    return p


def bottleneck_forward(x, p, stride, dilation):
    n, h, w_, cinp = x.shape
    out = matmul_bn(x.reshape(n * h * w_, cinp), p["w1"], p["b1"], relu=True)
    out = out.reshape(n, h, w_, -1)                              # 1x1 + bn + relu
    if p["im2col"]:
        out = conv3x3_im2col_bn(out, p["w2"], p["b2"], p["planes"],
                                dilation=dilation, relu=True)
    else:
        out = conv3x3_direct_bn(out, p["w2"], p["b2"],
                                dilation=dilation, relu=True)
    # TODO(synk): fusing this avgpool (and the identity avgpool below) into the
    # conv3 matmul would save 2-3 HBM passes per stride-2 block.
    out = avg_pool(out, stride)
    no, ho, wo, pp_ = out.shape
    out2 = out.reshape(no * ho * wo, pp_)
    if "wd" in p:
        # conv3 + downsample (avgpool + 1x1) + residual + relu fused in one call
        ident = avg_pool(x, stride).reshape(no * ho * wo, cinp)
        y = matmul_bn(out2, p["w3"], p["b3"], relu=True, x2b=ident, w2b=p["wd"])
    else:
        # TODO(synk): skip path is stored/re-read as bf16 (inference precision).
        y = matmul_bn(out2, p["w3"], p["b3"], relu=True,
                      residual=x.reshape(no * ho * wo, cinp))
    return y.reshape(no, ho, wo, -1)


# ------------------------------ ModifiedResNet -----------------------------

class ModifiedResNetPallas:
    expansion = 4

    def __init__(self, layers, width=64, strides=(2, 1, 2, 2, 2),
                 multi_grid=(1, 1, 1), key=None):
        key = jax.random.PRNGKey(0) if key is None else key
        ks = jax.random.split(key, 7)
        self.width = width
        self.strides = strides
        self.num_features = [width * 4, width * 8, width * 16, width * 32]

        c1 = width // 2
        self.c1 = c1
        c1p, wpd = _pad_c(c1), _pad_c(width)
        p = {}
        # stem conv1 (3 -> c1, stride 2) always uses im2col: K = 27 -> 32.
        p["w1"], p["b1"] = _pack_3x3_im2col(_init_conv(ks[0], 3, 3, 3, c1),
                                            _init_bn(ks[1], c1), c1p)
        self.stem_im2col = c1 < LANE
        if self.stem_im2col:
            p["w2"], p["b2"] = _pack_3x3_im2col(_init_conv(ks[2], 3, 3, c1, c1),
                                                _init_bn(ks[3], c1), c1p)
            p["w3"], p["b3"] = _pack_3x3_im2col(_init_conv(ks[4], 3, 3, c1, width),
                                                _init_bn(ks[5], width), wpd)
        else:
            p["w2"], p["b2"] = _pack_3x3_taps(_init_conv(ks[2], 3, 3, c1, c1),
                                              _init_bn(ks[3], c1), c1p, c1p)
            p["w3"], p["b3"] = _pack_3x3_taps(_init_conv(ks[4], 3, 3, c1, width),
                                              _init_bn(ks[5], width), c1p, wpd)
        self.params = p

        self._inplanes = width
        layer_key = ks[6]
        plane_mults = (1, 2, 4, 8)
        self.layer_params = []
        self.layer_cfgs = []
        for li in range(4):
            planes = width * plane_mults[li]
            blocks = layers[li]
            stride = strides[li + 1]
            dils = list(multi_grid) if li == 3 else [1] * blocks
            blk_params, blk_cfgs = [], []
            for bi in range(blocks):
                s = stride if bi == 0 else 1
                d = dils[bi] if bi < len(dils) else dils[-1]
                layer_key, sub = jax.random.split(layer_key)
                blk_params.append(init_bottleneck(sub, self._inplanes, planes, s))
                blk_cfgs.append((s, d))
                self._inplanes = planes * self.expansion
            self.layer_params.append(blk_params)
            self.layer_cfgs.append(blk_cfgs)

    def __call__(self, x_nchw):
        # input is NCHW (PyTorch convention) -> compute in NHWC / bf16
        x = jnp.transpose(x_nchw, (0, 2, 3, 1)).astype(jnp.bfloat16)
        n = x.shape[0]
        p = self.params
        # stem conv1: stride-2 3x3 on 3 input channels (im2col, K kept at 32)
        patches, ho, wo = _extract_patches(x, 3, 3, 2, 1, 1)
        k = patches.shape[-1]
        kp = p["w1"].shape[0]
        p2 = patches.reshape(n * ho * wo, k)
        if kp != k:
            p2 = jnp.pad(p2, ((0, 0), (0, kp - k)))
        x = matmul_bn(p2, p["w1"], p["b1"], relu=True).reshape(n, ho, wo, -1)
        # stem conv2 / conv3
        if self.stem_im2col:
            x = conv3x3_im2col_bn(x, p["w2"], p["b2"], self.c1, relu=True)
            x = conv3x3_im2col_bn(x, p["w3"], p["b3"], self.c1, relu=True)
        else:
            x = conv3x3_direct_bn(x, p["w2"], p["b2"], relu=True)
            x = conv3x3_direct_bn(x, p["w3"], p["b3"], relu=True)
        x = avg_pool(x, self.strides[0])
        # residual stages
        output = {}
        names = ["res2", "res3", "res4", "res5"]
        for li in range(4):
            for (s, d), bp in zip(self.layer_cfgs[li], self.layer_params[li]):
                x = bottleneck_forward(x, bp, s, d)
            c_true = self.num_features[li]
            output[names[li]] = jnp.transpose(
                x[..., :c_true], (0, 3, 1, 2)).astype(jnp.float32)
        return output


# ----------------------------------- main -----------------------------------

if __name__ == "__main__":
    key = jax.random.PRNGKey(0)
    # small, module-consistent shapes: batch=2, 3 input channels, 32x32 spatial
    x = jax.random.normal(key, (2, 3, 32, 32), jnp.float32)

    width = 16
    model = ModifiedResNetPallas(layers=[1, 1, 1, 1], width=width)

    # --- direct 3x3 path (>=128-channel layers) vs lax.conv ---
    cx = jax.random.normal(jax.random.PRNGKey(1), (1, 8, 8, 128),
                           jnp.float32).astype(jnp.bfloat16)
    cw = (0.05 * jax.random.normal(jax.random.PRNGKey(2), (3, 3, 128, 128),
                                   jnp.float32)).astype(jnp.bfloat16)
    got = conv3x3_direct_bn(cx, cw.reshape(9, 128, 128),
                            jnp.zeros((1, 128), jnp.float32),
                            dilation=1, relu=False).astype(jnp.float32)
    ref = jax.lax.conv_general_dilated(
        cx.astype(jnp.float32), cw.astype(jnp.float32), (1, 1), "SAME",
        dimension_numbers=("NHWC", "HWIO", "NHWC"))
    err = float(jnp.max(jnp.abs(got - ref)))
    assert err <= 2e-2 * (1.0 + float(jnp.max(jnp.abs(ref)))), err

    # --- im2col 3x3 path (low-channel layers) vs lax.conv ---
    cin_r = 32
    cx2 = jax.random.normal(jax.random.PRNGKey(3), (1, 8, 8, 128),
                            jnp.float32).astype(jnp.bfloat16)
    cw2 = (0.05 * jax.random.normal(jax.random.PRNGKey(4), (3, 3, cin_r, 128),
                                    jnp.float32)).astype(jnp.bfloat16)
    got2 = conv3x3_im2col_bn(cx2, cw2.reshape(9 * cin_r, 128),
                             jnp.zeros((1, 128), jnp.float32), cin_r,
                             dilation=1, relu=False).astype(jnp.float32)
    ref2 = jax.lax.conv_general_dilated(
        cx2[..., :cin_r].astype(jnp.float32), cw2.astype(jnp.float32), (1, 1),
        "SAME", dimension_numbers=("NHWC", "HWIO", "NHWC"))
    err2 = float(jnp.max(jnp.abs(got2 - ref2)))
    assert err2 <= 2e-2 * (1.0 + float(jnp.max(jnp.abs(ref2)))), err2

    fwd = jax.jit(model.__call__)
    out = fwd(x)
    out = jax.tree_util.tree_map(jax.block_until_ready, out)

    # shape sanity checks (num_features = [4w, 8w, 16w, 32w])
    assert out["res2"].shape == (2, width * 4, 8, 8), out["res2"].shape
    assert out["res3"].shape == (2, width * 8, 4, 4), out["res3"].shape
    assert out["res4"].shape == (2, width * 16, 2, 2), out["res4"].shape
    assert out["res5"].shape == (2, width * 32, 1, 1), out["res5"].shape
    assert all(bool(jnp.all(jnp.isfinite(v))) for v in out.values())

    print("KERNEL_OK")
</pallas_src>

<mosaic_0001>
module attributes {stable_mosaic.version = 11 : i64} {
  func.func @_conv3x3_direct_kernel(%arg0: i32, %arg1: i32, %arg2: memref<1x200x128xbf16, #tpu.memory_space<any>>, %arg3: memref<9x128x128xbf16, #tpu.memory_space<vmem>>, %arg4: memref<1x128xf32, #tpu.memory_space<vmem>>, %arg5: memref<1x160x128xbf16, #tpu.memory_space<vmem>>, %arg6: memref<2x200x128xbf16, #tpu.memory_space<vmem>>, %arg7: memref<2x!tpu.dma_semaphore, #tpu.memory_space<semaphore_mem>>) attributes {dimension_semantics = [#tpu.dimension_semantics<parallel>, #tpu.dimension_semantics<arbitrary>], iteration_bounds = array<i64: 1, 1>, scalar_prefetch = 0 : i64, scratch_operands = 2 : i64, tpu.core_type = #tpu.core_type<tc>, window_params = [{}, {pipeline_mode = #tpu.pipeline_mode<synchronous>, transform_indices = @transform_1, window_bounds = array<i64: 9, 128, 128>}, {pipeline_mode = #tpu.pipeline_mode<synchronous>, transform_indices = @transform_2, window_bounds = array<i64: 1, 128>}, {transform_indices = @transform_3, window_bounds = array<i64: 1, 160, 128>}]} {
    %c2_i32 = arith.constant 2 : i32
    %c0_i32 = arith.constant 0 : i32
    %0 = arith.cmpi eq, %c2_i32, %c0_i32 : i32
    %c1_i32 = arith.constant 1 : i32
    %1 = arith.select %0, %c1_i32, %c2_i32 : i32
    %2 = arith.remsi %arg1, %1 : i32
    %c0_i32_0 = arith.constant 0 : i32
    %3 = arith.cmpi ne, %2, %c0_i32_0 : i32
    %c0_i32_1 = arith.constant 0 : i32
    %4 = arith.cmpi slt, %2, %c0_i32_1 : i32
    %c0_i32_2 = arith.constant 0 : i32
    %5 = arith.cmpi slt, %1, %c0_i32_2 : i32
    %6 = arith.xori %4, %5 : i1
    %7 = arith.andi %6, %3 : i1
    %8 = arith.addi %2, %1 : i32
    %9 = arith.select %7, %8, %2 : i32
    %c0_i32_3 = arith.constant 0 : i32
    %10 = arith.cmpi eq, %arg1, %c0_i32_3 : i32
    %11 = arith.extui %10 : i1 to i32
    %c0_i32_4 = arith.constant 0 : i32
    %12 = arith.cmpi ne, %11, %c0_i32_4 : i32
    scf.if %12 {
      %c0_i32_72 = arith.constant 0 : i32
      %c0_i32_73 = arith.constant 0 : i32
      %c0_i32_74 = arith.constant 0 : i32
      %c0_i32_75 = arith.constant 0 : i32
      %93 = tpu.memref_slice %arg2[%arg0, %c0_i32_74, %c0_i32_75] : memref<1x200x128xbf16, #tpu.memory_space<any>> -> memref<1x200x128xbf16, #tpu.memory_space<any>>
      %94 = tpu.memref_squeeze %93 : memref<1x200x128xbf16, #tpu.memory_space<any>> -> memref<200x128xbf16, #tpu.memory_space<any>>
      %c0_i32_76 = arith.constant 0 : i32
      %c0_i32_77 = arith.constant 0 : i32
      %95 = tpu.memref_slice %arg6[%c0_i32_72, %c0_i32_76, %c0_i32_77] : memref<2x200x128xbf16, #tpu.memory_space<vmem>> -> memref<1x200x128xbf16, #tpu.memory_space<vmem>>
      %96 = tpu.memref_squeeze %95 : memref<1x200x128xbf16, #tpu.memory_space<vmem>> -> memref<200x128xbf16, #tpu.memory_space<vmem>>
      %97 = tpu.memref_slice %arg7[%c0_i32_73] : memref<2x!tpu.dma_semaphore, #tpu.memory_space<semaphore_mem>> -> memref<1x!tpu.dma_semaphore, #tpu.memory_space<semaphore_mem>>
      %98 = tpu.memref_squeeze %97 : memref<1x!tpu.dma_semaphore, #tpu.memory_space<semaphore_mem>> -> memref<!tpu.dma_semaphore, #tpu.memory_space<semaphore_mem>>
      tpu.enqueue_dma source(%94 : memref<200x128xbf16, #tpu.memory_space<any>>) target(%96 : memref<200x128xbf16, #tpu.memory_space<vmem>>) target_semaphore(%98 : memref<!tpu.dma_semaphore, #tpu.memory_space<semaphore_mem>>)
    } else {
    }
    %c1_i32_5 = arith.constant 1 : i32
    %13 = arith.addi %arg1, %c1_i32_5 : i32
    %c1_i32_6 = arith.constant 1 : i32
    %14 = arith.cmpi slt, %13, %c1_i32_6 : i32
    %15 = arith.extui %14 : i1 to i32
    %c0_i32_7 = arith.constant 0 : i32
    %16 = arith.cmpi ne, %15, %c0_i32_7 : i32
    scf.if %16 {
      %c1_i32_72 = arith.constant 1 : i32
      %93 = arith.addi %arg1, %c1_i32_72 : i32
      %c1_i32_73 = arith.constant 1 : i32
      %94 = arith.subi %c1_i32_73, %9 : i32
      %c160_i32_74 = arith.constant 160 : i32
      %95 = arith.muli %93, %c160_i32_74 : i32
      %c0_i32_75 = arith.constant 0 : i32
      %96 = tpu.memref_slice %arg2[%arg0, %95, %c0_i32_75] : memref<1x200x128xbf16, #tpu.memory_space<any>> -> memref<1x200x128xbf16, #tpu.memory_space<any>>
      %97 = tpu.memref_squeeze %96 : memref<1x200x128xbf16, #tpu.memory_space<any>> -> memref<200x128xbf16, #tpu.memory_space<any>>
      %c0_i32_76 = arith.constant 0 : i32
      %c0_i32_77 = arith.constant 0 : i32
      %98 = tpu.memref_slice %arg6[%94, %c0_i32_76, %c0_i32_77] : memref<2x200x128xbf16, #tpu.memory_space<vmem>> -> memref<1x200x128xbf16, #tpu.memory_space<vmem>>
      %99 = tpu.memref_squeeze %98 : memref<1x200x128xbf16, #tpu.memory_space<vmem>> -> memref<200x128xbf16, #tpu.memory_space<vmem>>
      %100 = tpu.memref_slice %arg7[%94] : memref<2x!tpu.dma_semaphore, #tpu.memory_space<semaphore_mem>> -> memref<1x!tpu.dma_semaphore, #tpu.memory_space<semaphore_mem>>
      %101 = tpu.memref_squeeze %100 : memref<1x!tpu.dma_semaphore, #tpu.memory_space<semaphore_mem>> -> memref<!tpu.dma_semaphore, #tpu.memory_space<semaphore_mem>>
      tpu.enqueue_dma source(%97 : memref<200x128xbf16, #tpu.memory_space<any>>) target(%99 : memref<200x128xbf16, #tpu.memory_space<vmem>>) target_semaphore(%101 : memref<!tpu.dma_semaphore, #tpu.memory_space<semaphore_mem>>)
    } else {
    }
    %c160_i32 = arith.constant 160 : i32
    %17 = arith.muli %arg1, %c160_i32 : i32
    %c0_i32_8 = arith.constant 0 : i32
    %18 = tpu.memref_slice %arg2[%arg0, %17, %c0_i32_8] : memref<1x200x128xbf16, #tpu.memory_space<any>> -> memref<1x200x128xbf16, #tpu.memory_space<any>>
    %19 = tpu.memref_squeeze %18 : memref<1x200x128xbf16, #tpu.memory_space<any>> -> memref<200x128xbf16, #tpu.memory_space<any>>
    %c0_i32_9 = arith.constant 0 : i32
    %c0_i32_10 = arith.constant 0 : i32
    %20 = tpu.memref_slice %arg6[%9, %c0_i32_9, %c0_i32_10] : memref<2x200x128xbf16, #tpu.memory_space<vmem>> -> memref<1x200x128xbf16, #tpu.memory_space<vmem>>
    %21 = tpu.memref_squeeze %20 : memref<1x200x128xbf16, #tpu.memory_space<vmem>> -> memref<200x128xbf16, #tpu.memory_space<vmem>>
    %22 = tpu.memref_slice %arg7[%9] : memref<2x!tpu.dma_semaphore, #tpu.memory_space<semaphore_mem>> -> memref<1x!tpu.dma_semaphore, #tpu.memory_space<semaphore_mem>>
    %23 = tpu.memref_squeeze %22 : memref<1x!tpu.dma_semaphore, #tpu.memory_space<semaphore_mem>> -> memref<!tpu.dma_semaphore, #tpu.memory_space<semaphore_mem>>
    tpu.wait_dma2 semaphore(%23 : memref<!tpu.dma_semaphore, #tpu.memory_space<semaphore_mem>>) src(%19 : memref<200x128xbf16, #tpu.memory_space<any>>) dst(%21 : memref<200x128xbf16, #tpu.memory_space<vmem>>)
    %c0_i32_11 = arith.constant 0 : i32
    %c0_i32_12 = arith.constant 0 : i32
    %24 = tpu.memref_slice %arg6[%9, %c0_i32_11, %c0_i32_12] : memref<2x200x128xbf16, #tpu.memory_space<vmem>> -> memref<1x200x128xbf16, #tpu.memory_space<vmem>>
    %25 = tpu.memref_squeeze %24 : memref<1x200x128xbf16, #tpu.memory_space<vmem>> -> memref<200x128xbf16, #tpu.memory_space<vmem>>
    %c0 = arith.constant 0 : index
    %c0_13 = arith.constant 0 : index
    %26 = vector.load %25[%c0, %c0_13] : memref<200x128xbf16, #tpu.memory_space<vmem>>, vector<160x128xbf16>
    %c0_14 = arith.constant 0 : index
    %c0_15 = arith.constant 0 : index
    %c0_16 = arith.constant 0 : index
    %27 = vector.load %arg3[%c0_14, %c0_15, %c0_16] : memref<9x128x128xbf16, #tpu.memory_space<vmem>>, vector<1x128x128xbf16>
    %28 = vector.shape_cast %27 : vector<1x128x128xbf16> to vector<128x128xbf16>
    %cst = arith.constant dense<0.000000e+00> : vector<160x128xf32>
    %29 = tpu.matmul %26, %28, %cst {dimension_numbers = #tpu.dot_dimension_numbers<[1], [0], [0], [1], [0, 0, 1, 1], [], []>} : vector<160x128xbf16>, vector<128x128xbf16>, vector<160x128xf32> -> vector<160x128xf32>
    %c0_i32_17 = arith.constant 0 : i32
    %c0_i32_18 = arith.constant 0 : i32
    %30 = tpu.memref_slice %arg6[%9, %c0_i32_17, %c0_i32_18] : memref<2x200x128xbf16, #tpu.memory_space<vmem>> -> memref<1x200x128xbf16, #tpu.memory_space<vmem>>
    %31 = tpu.memref_squeeze %30 : memref<1x200x128xbf16, #tpu.memory_space<vmem>> -> memref<200x128xbf16, #tpu.memory_space<vmem>>
    %c1 = arith.constant 1 : index
    %c0_19 = arith.constant 0 : index
    %32 = vector.load %31[%c1, %c0_19] : memref<200x128xbf16, #tpu.memory_space<vmem>>, vector<160x128xbf16>
    %c1_20 = arith.constant 1 : index
    %c0_21 = arith.constant 0 : index
    %c0_22 = arith.constant 0 : index
    %33 = vector.load %arg3[%c1_20, %c0_21, %c0_22] : memref<9x128x128xbf16, #tpu.memory_space<vmem>>, vector<1x128x128xbf16>
    %34 = vector.shape_cast %33 : vector<1x128x128xbf16> to vector<128x128xbf16>
    %cst_23 = arith.constant dense<0.000000e+00> : vector<160x128xf32>
    %35 = tpu.matmul %32, %34, %cst_23 {dimension_numbers = #tpu.dot_dimension_numbers<[1], [0], [0], [1], [0, 0, 1, 1], [], []>} : vector<160x128xbf16>, vector<128x128xbf16>, vector<160x128xf32> -> vector<160x128xf32>
    %36 = arith.addf %29, %35 : vector<160x128xf32>
    %c0_i32_24 = arith.constant 0 : i32
    %c0_i32_25 = arith.constant 0 : i32
    %37 = tpu.memref_slice %arg6[%9, %c0_i32_24, %c0_i32_25] : memref<2x200x128xbf16, #tpu.memory_space<vmem>> -> memref<1x200x128xbf16, #tpu.memory_space<vmem>>
    %38 = tpu.memref_squeeze %37 : memref<1x200x128xbf16, #tpu.memory_space<vmem>> -> memref<200x128xbf16, #tpu.memory_space<vmem>>
    %c2 = arith.constant 2 : index
    %c0_26 = arith.constant 0 : index
    %39 = vector.load %38[%c2, %c0_26] : memref<200x128xbf16, #tpu.memory_space<vmem>>, vector<160x128xbf16>
    %c2_27 = arith.constant 2 : index
    %c0_28 = arith.constant 0 : index
    %c0_29 = arith.constant 0 : index
    %40 = vector.load %arg3[%c2_27, %c0_28, %c0_29] : memref<9x128x128xbf16, #tpu.memory_space<vmem>>, vector<1x128x128xbf16>
    %41 = vector.shape_cast %40 : vector<1x128x128xbf16> to vector<128x128xbf16>
    %cst_30 = arith.constant dense<0.000000e+00> : vector<160x128xf32>
    %42 = tpu.matmul %39, %41, %cst_30 {dimension_numbers = #tpu.dot_dimension_numbers<[1], [0], [0], [1], [0, 0, 1, 1], [], []>} : vector<160x128xbf16>, vector<128x128xbf16>, vector<160x128xf32> -> vector<160x128xf32>
    %43 = arith.addf %36, %42 : vector<160x128xf32>
    %c0_i32_31 = arith.constant 0 : i32
    %c0_i32_32 = arith.constant 0 : i32
    %44 = tpu.memref_slice %arg6[%9, %c0_i32_31, %c0_i32_32] : memref<2x200x128xbf16, #tpu.memory_space<vmem>> -> memref<1x200x128xbf16, #tpu.memory_space<vmem>>
    %45 = tpu.memref_squeeze %44 : memref<1x200x128xbf16, #tpu.memory_space<vmem>> -> memref<200x128xbf16, #tpu.memory_space<vmem>>
    %c16 = arith.constant 16 : index
    %c0_33 = arith.constant 0 : index
    %46 = vector.load %45[%c16, %c0_33] : memref<200x128xbf16, #tpu.memory_space<vmem>>, vector<160x128xbf16>
    %c3 = arith.constant 3 : index
    %c0_34 = arith.constant 0 : index
    %c0_35 = arith.constant 0 : index
    %47 = vector.load %arg3[%c3, %c0_34, %c0_35] : memref<9x128x128xbf16, #tpu.memory_space<vmem>>, vector<1x128x128xbf16>
    %48 = vector.shape_cast %47 : vector<1x128x128xbf16> to vector<128x128xbf16>
    %cst_36 = arith.constant dense<0.000000e+00> : vector<160x128xf32>
    %49 = tpu.matmul %46, %48, %cst_36 {dimension_numbers = #tpu.dot_dimension_numbers<[1], [0], [0], [1], [0, 0, 1, 1], [], []>} : vector<160x128xbf16>, vector<128x128xbf16>, vector<160x128xf32> -> vector<160x128xf32>
    %50 = arith.addf %43, %49 : vector<160x128xf32>
    %c0_i32_37 = arith.constant 0 : i32
    %c0_i32_38 = arith.constant 0 : i32
    %51 = tpu.memref_slice %arg6[%9, %c0_i32_37, %c0_i32_38] : memref<2x200x128xbf16, #tpu.memory_space<vmem>> -> memref<1x200x128xbf16, #tpu.memory_space<vmem>>
    %52 = tpu.memref_squeeze %51 : memref<1x200x128xbf16, #tpu.memory_space<vmem>> -> memref<200x128xbf16, #tpu.memory_space<vmem>>
    %c17 = arith.constant 17 : index
    %c0_39 = arith.constant 0 : index
    %53 = vector.load %52[%c17, %c0_39] : memref<200x128xbf16, #tpu.memory_space<vmem>>, vector<160x128xbf16>
    %c4 = arith.constant 4 : index
    %c0_40 = arith.constant 0 : index
    %c0_41 = arith.constant 0 : index
    %54 = vector.load %arg3[%c4, %c0_40, %c0_41] : memref<9x128x128xbf16, #tpu.memory_space<vmem>>, vector<1x128x128xbf16>
    %55 = vector.shape_cast %54 : vector<1x128x128xbf16> to vector<128x128xbf16>
    %cst_42 = arith.constant dense<0.000000e+00> : vector<160x128xf32>
    %56 = tpu.matmul %53, %55, %cst_42 {dimension_numbers = #tpu.dot_dimension_numbers<[1], [0], [0], [1], [0, 0, 1, 1], [], []>} : vector<160x128xbf16>, vector<128x128xbf16>, vector<160x128xf32> -> vector<160x128xf32>
    %57 = arith.addf %50, %56 : vector<160x128xf32>
    %c0_i32_43 = arith.constant 0 : i32
    %c0_i32_44 = arith.constant 0 : i32
    %58 = tpu.memref_slice %arg6[%9, %c0_i32_43, %c0_i32_44] : memref<2x200x128xbf16, #tpu.memory_space<vmem>> -> memref<1x200x128xbf16, #tpu.memory_space<vmem>>
    %59 = tpu.memref_squeeze %58 : memref<1x200x128xbf16, #tpu.memory_space<vmem>> -> memref<200x128xbf16, #tpu.memory_space<vmem>>
    %c18 = arith.constant 18 : index
    %c0_45 = arith.constant 0 : index
    %60 = vector.load %59[%c18, %c0_45] : memref<200x128xbf16, #tpu.memory_space<vmem>>, vector<160x128xbf16>
    %c5 = arith.constant 5 : index
    %c0_46 = arith.constant 0 : index
    %c0_47 = arith.constant 0 : index
    %61 = vector.load %arg3[%c5, %c0_46, %c0_47] : memref<9x128x128xbf16, #tpu.memory_space<vmem>>, vector<1x128x128xbf16>
    %62 = vector.shape_cast %61 : vector<1x128x128xbf16> to vector<128x128xbf16>
    %cst_48 = arith.constant dense<0.000000e+00> : vector<160x128xf32>
    %63 = tpu.matmul %60, %62, %cst_48 {dimension_numbers = #tpu.dot_dimension_numbers<[1], [0], [0], [1], [0, 0, 1, 1], [], []>} : vector<160x128xbf16>, vector<128x128xbf16>, vector<160x128xf32> -> vector<160x128xf32>
    %64 = arith.addf %57, %63 : vector<160x128xf32>
    %c0_i32_49 = arith.constant 0 : i32
    %c0_i32_50 = arith.constant 0 : i32
    %65 = tpu.memref_slice %arg6[%9, %c0_i32_49, %c0_i32_50] : memref<2x200x128xbf16, #tpu.memory_space<vmem>> -> memref<1x200x128xbf16, #tpu.memory_space<vmem>>
    %66 = tpu.memref_squeeze %65 : memref<1x200x128xbf16, #tpu.memory_space<vmem>> -> memref<200x128xbf16, #tpu.memory_space<vmem>>
    %c32 = arith.constant 32 : index
    %c0_51 = arith.constant 0 : index
    %67 = vector.load %66[%c32, %c0_51] : memref<200x128xbf16, #tpu.memory_space<vmem>>, vector<160x128xbf16>
    %c6 = arith.constant 6 : index
    %c0_52 = arith.constant 0 : index
    %c0_53 = arith.constant 0 : index
    %68 = vector.load %arg3[%c6, %c0_52, %c0_53] : memref<9x128x128xbf16, #tpu.memory_space<vmem>>, vector<1x128x128xbf16>
    %69 = vector.shape_cast %68 : vector<1x128x128xbf16> to vector<128x128xbf16>
    %cst_54 = arith.constant dense<0.000000e+00> : vector<160x128xf32>
    %70 = tpu.matmul %67, %69, %cst_54 {dimension_numbers = #tpu.dot_dimension_numbers<[1], [0], [0], [1], [0, 0, 1, 1], [], []>} : vector<160x128xbf16>, vector<128x128xbf16>, vector<160x128xf32> -> vector<160x128xf32>
    %71 = arith.addf %64, %70 : vector<160x128xf32>
    %c0_i32_55 = arith.constant 0 : i32
    %c0_i32_56 = arith.constant 0 : i32
    %72 = tpu.memref_slice %arg6[%9, %c0_i32_55, %c0_i32_56] : memref<2x200x128xbf16, #tpu.memory_space<vmem>> -> memref<1x200x128xbf16, #tpu.memory_space<vmem>>
    %73 = tpu.memref_squeeze %72 : memref<1x200x128xbf16, #tpu.memory_space<vmem>> -> memref<200x128xbf16, #tpu.memory_space<vmem>>
    %c33 = arith.constant 33 : index
    %c0_57 = arith.constant 0 : index
    %74 = vector.load %73[%c33, %c0_57] : memref<200x128xbf16, #tpu.memory_space<vmem>>, vector<160x128xbf16>
    %c7 = arith.constant 7 : index
    %c0_58 = arith.constant 0 : index
    %c0_59 = arith.constant 0 : index
    %75 = vector.load %arg3[%c7, %c0_58, %c0_59] : memref<9x128x128xbf16, #tpu.memory_space<vmem>>, vector<1x128x128xbf16>
    %76 = vector.shape_cast %75 : vector<1x128x128xbf16> to vector<128x128xbf16>
    %cst_60 = arith.constant dense<0.000000e+00> : vector<160x128xf32>
    %77 = tpu.matmul %74, %76, %cst_60 {dimension_numbers = #tpu.dot_dimension_numbers<[1], [0], [0], [1], [0, 0, 1, 1], [], []>} : vector<160x128xbf16>, vector<128x128xbf16>, vector<160x128xf32> -> vector<160x128xf32>
    %78 = arith.addf %71, %77 : vector<160x128xf32>
    %c0_i32_61 = arith.constant 0 : i32
    %c0_i32_62 = arith.constant 0 : i32
    %79 = tpu.memref_slice %arg6[%9, %c0_i32_61, %c0_i32_62] : memref<2x200x128xbf16, #tpu.memory_space<vmem>> -> memref<1x200x128xbf16, #tpu.memory_space<vmem>>
    %80 = tpu.memref_squeeze %79 : memref<1x200x128xbf16, #tpu.memory_space<vmem>> -> memref<200x128xbf16, #tpu.memory_space<vmem>>
    %c34 = arith.constant 34 : index
    %c0_63 = arith.constant 0 : index
    %81 = vector.load %80[%c34, %c0_63] : memref<200x128xbf16, #tpu.memory_space<vmem>>, vector<160x128xbf16>
    %c8 = arith.constant 8 : index
    %c0_64 = arith.constant 0 : index
    %c0_65 = arith.constant 0 : index
    %82 = vector.load %arg3[%c8, %c0_64, %c0_65] : memref<9x128x128xbf16, #tpu.memory_space<vmem>>, vector<1x128x128xbf16>
    %83 = vector.shape_cast %82 : vector<1x128x128xbf16> to vector<128x128xbf16>
    %cst_66 = arith.constant dense<0.000000e+00> : vector<160x128xf32>
    %84 = tpu.matmul %81, %83, %cst_66 {dimension_numbers = #tpu.dot_dimension_numbers<[1], [0], [0], [1], [0, 0, 1, 1], [], []>} : vector<160x128xbf16>, vector<128x128xbf16>, vector<160x128xf32> -> vector<160x128xf32>
    %85 = arith.addf %78, %84 : vector<160x128xf32>
    %c0_67 = arith.constant 0 : index
    %c0_68 = arith.constant 0 : index
    %86 = vector.load %arg4[%c0_67, %c0_68] : memref<1x128xf32, #tpu.memory_space<vmem>>, vector<1x128xf32>
    %87 = vector.broadcast %86 : vector<1x128xf32> to vector<160x128xf32>
    %88 = arith.addf %85, %87 : vector<160x128xf32>
    %89 = arith.truncf %88 : vector<160x128xf32> to vector<160x128xbf16>
    %c0_69 = arith.constant 0 : index
    %c0_70 = arith.constant 0 : index
    %c0_71 = arith.constant 0 : index
    %90 = vector.load %arg5[%c0_69, %c0_70, %c0_71] : memref<1x160x128xbf16, #tpu.memory_space<vmem>>, vector<1x160x128xbf16>
    %91 = vector.shape_cast %90 : vector<1x160x128xbf16> to vector<160x128xbf16>
    %92 = vector.shape_cast %89 : vector<160x128xbf16> to vector<1x160x128xbf16>
    tpu.vector_store %arg5[%c0_69, %c0_70, %c0_71], %92 {strides = array<i32>} : memref<1x160x128xbf16, #tpu.memory_space<vmem>>, vector<1x160x128xbf16>,
    return
  }
  func.func @transform_1(%arg0: i32, %arg1: i32) -> (i32, i32, i32) {
    %c0_i32 = arith.constant 0 : i32
    %c0_i32_0 = arith.constant 0 : i32
    %c0_i32_1 = arith.constant 0 : i32
    %c0_i32_2 = arith.constant 0 : i32
    return %c0_i32, %c0_i32_0, %c0_i32_1 : i32, i32, i32
  }
  func.func @transform_2(%arg0: i32, %arg1: i32) -> (i32, i32) {
    %c0_i32 = arith.constant 0 : i32
    %c0_i32_0 = arith.constant 0 : i32
    %c0_i32_1 = arith.constant 0 : i32
    return %c0_i32, %c0_i32_0 : i32, i32
  }
  func.func @transform_3(%arg0: i32, %arg1: i32) -> (i32, i32, i32) {
    %c0_i32 = arith.constant 0 : i32
    %c0_i32_0 = arith.constant 0 : i32
    return %arg0, %arg1, %c0_i32 : i32, i32, i32
  }
}

</mosaic_0001>

<bundles_post_ra>
// kernel: tpu_custom_call.1
= control target key start
LH: loop header
LB: loop body
LE: loop exit
PB: predicated region body
PF: predicated region fallthrough
CT: control target
= control target key end

     0   :  { %8 = vsyncpa [#allocation5], 0  ;;  %s4249_s0 = inlined_call_operand.hbm [shape: bf16[1,200,128], index: 0, kind: input, shape index: {}]   ;;  %s4250_s1 = inlined_call_operand.hbm [shape: bf16[9,128,128], index: 1, kind: input, shape index: {}]   ;;  %s4251_s2 = inlined_call_operand.vmem [shape: f32[1,128], index: 2, kind: input, shape index: {}]   ;;  %s4252_s3 = inlined_call_operand.hbm [shape: bf16[1,160,128], index: 3, kind: output, shape index: {}]  }
   0x1   :  { %9 = vsyncpa [#allocation6], 0  ;;  %s3874_s12 = smov [#allocation4]   ;;  %s3802_s16 = scalar_lea.hbm %s4250_s1, 9216 }
   0x2   :  { %s15_s13 = sshll.u32 %s3874_s12, 4  ;;  %p3803_p0 = scmp.ne.s32.totalorder %s4250_s1, %s3802_s16  ;;  %s16_s13 = int_to_ptr.vmem [resolvable:$true] %s15_s13 }
   0x3   :  { %p3806_p1 = scmp.lt.u32.totalorder %s3802_s16, %s4250_s1 }
   0x5   :  { %p3808_p2 = pnand %p3806_p1, %p3803_p0 }
   0x7   :  { %3811 = shalt.err (!%p3808_p2)
}
   0x8   :  { %s3812_s21 = scalar_lea.vmem %s16_s13, 9216  ;;  %p3817_p4 = scmp.lt.s32.totalorder %s16_s13, %s16_s13 }
   0x9   :  { %p3813_p3 = scmp.ne.s32.totalorder %s16_s13, %s3812_s21  ;;  %p3818_p5 = scmp.lt.s32.totalorder %s3812_s21, %s3812_s21 }
   0xb   :  { %p3819_p6 = por %p3818_p5, %p3817_p4 }
   0xd   :  { %p3820_p7 = pnand %p3819_p6, %p3813_p3 }
   0xf   :  { %3823 = shalt.err (!%p3820_p7)
}
  0x10   :  { %s3875_s22 = smov 64   ;;  %s3876_s23 = smov 4  }
  0x11   :  { %21 = dma.hbm_to_vmem [thread:$0]  %s4250_s1, 9216, %s16_s13, [#allocation5], %s3875_s22, %s3875_s22, %s3876_s23  }
  0x12   :  { %3868 = dma.done.wait [#allocation5], 9216  }
  0x13   :  { %3869 = vsyncadd [#allocation5], 4294958080  ;;  %s3877_s26 = smov [#allocation2]   ;;  %s3824_s30 = scalar_lea.hbm %s4249_s0, 1600 }
  0x14   :  { %s50_s27 = sshll.u32 %s3877_s26, 4  ;;  %p3825_p8 = scmp.ne.s32.totalorder %s4249_s0, %s3824_s30  ;;  %s51_s27 = int_to_ptr.vmem [resolvable:$true] %s50_s27 }
  0x15   :  { %p3828_p9 = scmp.lt.u32.totalorder %s3824_s30, %s4249_s0 }
  0x17   :  { %p3830_p10 = pnand %p3828_p9, %p3825_p8 }
  0x19   :  { %3833 = shalt.err (!%p3830_p10)  }
  0x1a   :  { %s3834_s1 = scalar_lea.vmem %s51_s27, 1600  ;;  %s3838_s8 = scalar_lea.vmem %s51_s27, 3200 }
  0x1b   :  { %p3835_p11 = scmp.ne.s32.totalorder %s51_s27, %s3834_s1  ;;  %p3839_p12 = scmp.lt.s32.totalorder %s51_s27, %s51_s27 }
  0x1c   :  { %p3840_p13 = scmp.lt.s32.totalorder %s3838_s8, %s3834_s1 }
  0x1e   :  { %p3841_p0 = por %p3840_p13, %p3839_p12 }
  0x20   :  { %p3842_p1 = pnand %p3841_p0, %p3835_p11 }
  0x22   :  { %3845 = shalt.err (!%p3842_p1)  }
  0x23   :  { %53 = dma.hbm_to_vmem [thread:$0]  %s4249_s0, 1600, %s51_s27, [#allocation3] }
  0x24   :  { %3870 = dma.done.wait [#allocation3], 1600 }
  0x25   :  { %3871 = vsyncadd [#allocation3], 4294965696  ;;  %v3674_v0 = vld [vmem:[#allocation4 + $0x40] sm:$0xff]   ;;  %v3676_v2 = vld [vmem:[#allocation4 + $0x48] sm:$0xff]   ;;  %vm197_vm0 = vsmask.f32 7424 }
  0x26   :  { %v3675_v1 = vld [vmem:[#allocation4 + $0x100] sm:$0xff]   ;;  %3169 = vmatprep.subr.bf16.mxu1 %v3674_v0  ;;  %v3677_v3 = vld [vmem:[#allocation4 + $0x108] sm:$0xff]   ;;  %v3678_v4 = vld [vmem:[#allocation4 + $0x50] sm:$0xff]   ;;  %vm645_vm1 = vcmask 1046528  }
  0x27   :  { %3313 = vmatprep.subr.bf16.mxu0 %v3675_v1  ;;  %3170 = vmatpush3.bf16.msra.mxu1 %v3674_v0  ;;  %v3679_v5 = vld [vmem:[#allocation4 + $0x110] sm:$0xff]   ;;  %v3680_v6 = vld [vmem:[#allocation4 + $0x58] sm:$0xff]   ;;  %v3682_v8 = vld [vmem:[#allocation4 + $0x60] sm:$0xff]  }
  0x28   :  { %3314 = vmatpush3.bf16.msra.mxu0 %v3675_v1  ;;  %3171 = vmatprep.subr.bf16.mxu1 %v3676_v2  ;;  %v3681_v7 = vld [vmem:[#allocation4 + $0x118] sm:$0xff]   ;;  %v3683_v9 = vld [vmem:[#allocation4 + $0x120] sm:$0xff]   ;;  %v3684_v10 = vld [vmem:[#allocation4 + $0x68] sm:$0xff]  }
  0x29   :  { %3315 = vmatprep.subr.bf16.mxu0 %v3677_v3  ;;  %v3685_v11 = vld [vmem:[#allocation4 + $0x128] sm:$0xff]   ;;  %v90_v12 = vld [vmem:[#allocation2] sm:$0xf]  ;;  %v3926_v13 = vld [vmem:[#allocation2 + $0x4] sm:$0xf] }
  0x2a   :  { %v3929_v14 = vcombine.low %v90_v12, %v3926_v13  ;;  %v3931_v15 = vld [vmem:[#allocation2 + $0x8] sm:$0xff]   ;;  %v3686_v17 = vld [vmem:[#allocation4 + $0x70] sm:$0xff]   ;;  %v3939_v24 = vld [vmem:[#allocation2 + $0x10] sm:$0xff]  }
  0x2b   :  { %3172 = vmatpush3.bf16.msra.mxu1 %v3676_v2  ;;  %v1136_v16 = vld [vmem:[#allocation2 + $0x8] sm:$0xf]  ;;  %v3933_v18 = vld [vmem:[#allocation2 + $0xc] sm:$0xf]  ;;  %v3687_v19 = vld [vmem:[#allocation4 + $0x130] sm:$0xff]   ;;  %v206_v22 = vshll.u32 %v3931_v15, 16 }
  0x2c   :  { %3316 = vmatpush3.bf16.msra.mxu0 %v3677_v3  ;;  %3173 = vmatprep.subr.bf16.mxu1 %v3678_v4  ;;  %v199_v20 = vshrl.u32 %v3929_v14, 16  ;;  %v201_v21 = vshll.u32 %v3929_v14, 16  ;;  %v2831_v23 = vcombine.low %v1136_v16, %v3933_v18  ;;  %v3941_v25 = vld [vmem:[#allocation2 + $0x10] sm:$0xff]   ;;  %v3688_v30 = vld [vmem:[#allocation4 + $0x78] sm:$0xff]   ;;  %v1235_v31 = vshll.u32 %v3939_v24, 16  ;;  %v3945_v33 = vld [vmem:[#allocation2 + $0x18] sm:$0xff]  }
  0x2d   :  { %3317 = vmatprep.subr.bf16.mxu0 %v3679_v5  ;;  %v208_v27 = vrot.slane %v206_v22, 1  ;;  %v214_v32 = vshll.u32 %v3941_v25, 16  ;;  %v3689_v34 = vld [vmem:[#allocation4 + $0x138] sm:$0xff]   ;;  %v210_v37 = vshrl.u32 %v3931_v15, 16  ;;  %v1239_v40 = vshrl.u32 %v3939_v24, 16  ;;  %v3951_v44 = vld [vmem:[#allocation2 + $0x18] sm:$0xff]  }
  0x2e   :  { %v203_v26 = vrot.slane %v201_v21, 1  ;;  %v1228_v28 = vshrl.u32 %v2831_v23, 16  ;;  %v1230_v29 = vshll.u32 %v2831_v23, 16  ;;  %v1237_v38 = vrot.slane %v1235_v31, 1  ;;  %v3954_v47 = vld [vmem:[#allocation2 + $0x20] sm:$0xff]   ;;  %v3696_v50 = vld [vmem:[#allocation4 + $0x140] sm:$0xff]  }
  0x2f   :  { %3174 = vmatpush3.bf16.msra.mxu1 %v3678_v4  ;;  %v216_v39 = vrot.slane %v214_v32, 1  ;;  %v1243_v41 = vshll.u32 %v3945_v33, 16  ;;  %v218_v45 = vshrl.u32 %v3941_v25, 16  ;;  %v212_v49 = vor.u32 %v210_v37, %v208_v27  ;;  %v3960_v56 = vld [vmem:[#allocation2 + $0x20] sm:$0xff]   ;;  %v3701_v57 = vld [vmem:[#allocation4] sm:$0xff]   ;;  %v3697_v0 = vld [vmem:[#allocation4 + $0x148] sm:$0xff]  }
  0x30   :  { %3318 = vmatpush3.bf16.msra.mxu0 %v3679_v5  ;;  %3175 = vmatprep.subr.bf16.mxu1 %v3680_v6  ;;  %v204_v35 = vor.u32 %v203_v26, %v199_v20  ;;  %v1232_v36 = vrot.slane %v1230_v29, 1  ;;  %v222_v51 = vshll.u32 %v3951_v44, 16  ;;  %v1247_v52 = vshrl.u32 %v3945_v33, 16  ;;  %v3962_v60 = vld [vmem:[#allocation2 + $0x28] sm:$0xff]   ;;  %v3976_v12 = vld [vmem:[#allocation2 + $0x30] sm:$0xff]   ;;  %v3707_v32 = vld [vmem:[#allocation4 + $0x158] sm:$0xff]  }
  0x31   :  { %3319 = vmatprep.subr.bf16.mxu0 %v3681_v7  ;;  %v1245_v46 = vrot.slane %v1243_v41, 1  ;;  %v1241_v53 = vor.u32 %v1239_v40, %v1237_v38  ;;  %v220_v54 = vor.u32 %v218_v45, %v216_v39  ;;  %v1251_v55 = vshll.u32 %v3954_v47, 16  ;;  %v3992_v45 = vld [vmem:[#allocation2 + $0x38] sm:$0xff]  }
  0x32   :  { %v209_v42 = vsel %vm197_vm0, %v204_v35, %v208_v27  ;;  %v1233_v43 = vor.u32 %v1232_v36, %v1228_v28  ;;  %v224_v58 = vrot.slane %v222_v51, 1  ;;  %v230_v62 = vshll.u32 %v3960_v56, 16  ;;  %v3980_v28 = vld [vmem:[#allocation2 + $0x30] sm:$0xff]   ;;  %v3985_v36 = vld [vmem:[#allocation2 + $0x38] sm:$0xff]  }
  0x33   :  { %3176 = vmatpush3.bf16.msra.mxu1 %v3680_v6  ;;  %3185 = vmatprep.mubr.bf16.mxu1 %v209_v42  ;;  %v1249_v59 = vor.u32 %v1247_v52, %v1245_v46  ;;  %v1253_v61 = vrot.slane %v1251_v55, 1  ;;  %v217_v63 = vsel %vm197_vm0, %v212_v49, %v216_v39  ;;  %v226_v1 = vshrl.u32 %v3951_v44, 16  ;;  %v3704_v6 = vld [vmem:[#allocation4 + $0x8] sm:$0xff]   ;;  %v3712_v55 = vld [vmem:[#allocation4 + $0x160] sm:$0xff]  }
  0x34   :  { %3320 = vmatpush3.bf16.msra.mxu0 %v3681_v7  ;;  %3177 = vmatprep.subr.bf16.mxu1 %v3682_v8  ;;  %v1238_v48 = vsel %vm197_vm0, %v1233_v43, %v1237_v38  ;;  %v1259_v2 = vshll.u32 %v3962_v60, 16  ;;  %v1246_v3 = vsel %vm197_vm0, %v1241_v53, %v1245_v46  ;;  %v225_v4 = vsel %vm197_vm0, %v220_v54, %v224_v58  ;;  %v3971_v7 = vld [vmem:[#allocation2 + $0x28] sm:$0xff]   ;;  %v3711_v43 = vld [vmem:[#allocation4 + $0x18] sm:$0xff]  }
  0x35   :  { %3321 = vmatprep.subr.bf16.mxu0 %v3683_v9  ;;  %3329 = vmatprep.mubr.bf16.mxu0 %v1238_v48  ;;  %v1255_v5 = vshrl.u32 %v3954_v47, 16  ;;  %v228_v16 = vor.u32 %v226_v1, %v224_v58  ;;  %v1263_v20 = vshrl.u32 %v3962_v60, 16  ;;  %v1267_v26 = vshll.u32 %v3976_v12, 16  ;;  %v3995_v48 = vld [vmem:[#allocation2 + $0x40] sm:$0xff]  }
  0x36   :  { %v246_v35 = vshll.u32 %v3980_v28, 16  ;;  %v1271_v37 = vshrl.u32 %v3976_v12, 16  ;;  %v1275_v42 = vshll.u32 %v3985_v36, 16  ;;  %v250_v46 = vshrl.u32 %v3980_v28, 16  ;;  %v3999_v53 = vld [vmem:[#allocation2 + $0x40] sm:$0xff]  }
  0x37   :  { %3178 = vmatpush3.bf16.msra.mxu1 %v3682_v8  ;;  %v1254_v8 = vsel %vm197_vm0, %v1249_v59, %v1253_v61  ;;  %v1257_v21 = vor.u32 %v1255_v5, %v1253_v61  ;;  %v1269_v29 = vrot.slane %v1267_v26, 1  ;;  %v254_v51 = vshll.u32 %v3992_v45, 16 }
  0x38   :  { %3322 = vmatpush3.bf16.msra.mxu0 %v3683_v9  ;;  %3179 = vmatprep.subr.bf16.mxu1 %v3684_v10  ;;  %v232_v9 = vrot.slane %v230_v62, 1  ;;  %v248_v41 = vrot.slane %v246_v35, 1  ;;  %v1279_v52 = vshrl.u32 %v3985_v36, 16  ;;  %v1283_v58 = vshll.u32 %v3995_v48, 16  ;;  %v3724_v35 = vld [vmem:[#allocation4 + $0x30] sm:$0xff]  }
  0x39   :  { %3323 = vmatprep.subr.bf16.mxu0 %v3685_v11  ;;  %v1273_v54 = vor.u32 %v1271_v37, %v1269_v29  ;;  %v256_v59 = vrot.slane %v254_v51, 1  ;;  %v262_v62 = vshll.u32 %v3999_v53, 16  ;;  %v1287_v5 = vshrl.u32 %v3995_v48, 16  ;;  %v3726_v51 = vld [vmem:[#allocation4 + $0x178] sm:$0xff]  }
  0x3a   :  { %v233_v31 = vsel %vm197_vm0, %v228_v16, %v232_v9  ;;  %v3719_v16 = vld [vmem:[#allocation4 + $0x28] sm:$0xff]  }
  0x3b   :  { %3180 = vmatpush3.bf16.msra.mxu1 %v3684_v10  ;;  %v234_v10 = vshrl.u32 %v3960_v56, 16 }
  0x3c   :  { %3324 = vmatpush3.bf16.msra.mxu0 %v3685_v11  ;;  %3181 = vmatprep.subr.bf16.mxu1 %v3686_v17  ;;  %v238_v11 = vshll.u32 %v3971_v7, 16 }
  0x3d   :  { %3325 = vmatprep.subr.bf16.mxu0 %v3687_v19  ;;  %v236_v22 = vor.u32 %v234_v10, %v232_v9 }
  0x3e   :  { %v240_v23 = vrot.slane %v238_v11, 1  ;;  %v3718_v11 = vld [vmem:[#allocation4 + $0x168] sm:$0xff]  }
  0x3f   :  { %3182 = vmatpush3.bf16.msra.mxu1 %v3686_v17  ;;  %v1261_v17 = vrot.slane %v1259_v2, 1  ;;  %v258_v2 = vshrl.u32 %v3992_v45, 16 }
  0x40   :  { %3326 = vmatpush3.bf16.msra.mxu0 %v3687_v19  ;;  %3183 = vmatprep.subr.bf16.mxu1 %v3688_v30  ;;  %v3703_v19 = vld [vmem:[#allocation4 + $0x150] sm:$0xff]   ;;  %v241_v39 = vsel %vm197_vm0, %v236_v22, %v240_v23 }
  0x41   :  { %3327 = vmatprep.subr.bf16.mxu0 %v3689_v34  ;;  %v1265_v27 = vor.u32 %v1263_v20, %v1261_v17  ;;  %v1262_v38 = vsel %vm197_vm0, %v1257_v21, %v1261_v17  ;;  %v266_v17 = vshrl.u32 %v3999_v53, 16  ;;  %v4013_v21 = vld [vmem:[#allocation2 + $0x48] sm:$0xff]  }
  0x43   :  { %3184 = vmatpush3.bf16.msra.mxu1 %v3688_v30  ;;  %v3709_v30 = vld [vmem:[#allocation4 + $0x10] sm:$0xff]   ;;  %v1270_v40 = vsel %vm197_vm0, %v1265_v27, %v1269_v29 }
  0x44   :  { %3328 = vmatpush3.bf16.msra.mxu0 %v3689_v34  ;;  %3205 = vmatprep.subr.bf16.mxu1 %v3701_v57  ;;  %v242_v34 = vshrl.u32 %v3971_v7, 16  ;;  %v3720_v27 = vld [vmem:[#allocation4 + $0x170] sm:$0xff]  }
  0x45   :  { %3349 = vmatprep.subr.bf16.mxu0 %v3696_v50 }
  0x46   :  { %3186 = vmatmul.mubr.bf16.vlgmr.msra.gmra.mrb[0].mxu1 %v217_v63  ;;  %v244_v49 = vor.u32 %v242_v34, %v240_v23  ;;  %v1285_v63 = vrot.slane %v1283_v58, 1  ;;  %v4015_v23 = vld [vmem:[#allocation2 + $0x50] sm:$0xff]  }
  0x47   :  { %3330 = vmatmul.mubr.bf16.vlgmr.msra.gmra.mrb[0].mxu0 %v1246_v3  ;;  %3189 = vmatprep.mubr.bf16.mxu1 %v225_v4  ;;  %v264_v3 = vrot.slane %v262_v62, 1  ;;  %v4005_v4 = vld [vmem:[#allocation2 + $0x48] sm:$0xff]   ;;  %v1299_v34 = vshll.u32 %v4015_v23, 16 }
  0x48   :  { %3350 = vmatpush3.bf16.msra.mxu0 %v3696_v50  ;;  %3333 = vmatprep.mubr.bf16.mxu0 %v1254_v8  ;;  %v1277_v50 = vrot.slane %v1275_v42, 1  ;;  %v249_v1 = vsel %vm197_vm0, %v244_v49, %v248_v41  ;;  %v1291_v10 = vshll.u32 %v4005_v4, 16  ;;  %v1289_v22 = vor.u32 %v1287_v5, %v1285_v63 }
  0x49   :  { %3351 = vmatprep.subr.bf16.mxu0 %v3697_v0  ;;  %3206 = vmatpush3.bf16.msra.mxu1 %v3701_v57  ;;  %v252_v57 = vor.u32 %v250_v46, %v248_v41  ;;  %v1295_v26 = vshrl.u32 %v4005_v4, 16  ;;  %v268_v29 = vor.u32 %v266_v17, %v264_v3  ;;  %v4025_v41 = vld [vmem:[#allocation2 + $0x58] ss:$0 sps:$4 sm:$0x11]   ;;  %v1303_v46 = vshrl.u32 %v4015_v23, 16 }
  0x4a   :  { %3207 = vmatprep.subr.bf16.mxu1 %v3704_v6  ;;  %v1281_v61 = vor.u32 %v1279_v52, %v1277_v50  ;;  %v1293_v20 = vrot.slane %v1291_v10, 1  ;;  %v651_v10 = vrot.slane %v3951_v44, 1  ;;  %v653_v17 = vrot.slane %v3960_v56, 1 }
  0x4b   :  { %v257_v8 = vsel %vm197_vm0, %v252_v57, %v256_v59 }
  0x4c   :  { %3352 = vmatpush3.bf16.msra.mxu0 %v3697_v0  ;;  %v3716_v0 = vld [vmem:[#allocation4 + $0x20] sm:$0xff]   ;;  %v1286_v9 = vsel %vm197_vm0, %v1281_v61, %v1285_v63  ;;  %v1294_v42 = vsel %vm197_vm0, %v1289_v22, %v1293_v20  ;;  %v624_v22 = vld [vmem:[#allocation2] sm:$0xe] }
  0x4d   :  { %3353 = vmatprep.subr.bf16.mxu0 %v3703_v19  ;;  %3208 = vmatpush3.bf16.msra.mxu1 %v3704_v6  ;;  %v1278_v6 = vsel %vm197_vm0, %v1273_v54, %v1277_v50  ;;  %v1307_v50 = vshll.u32 %v4025_v41, 16  ;;  %v3727_v54 = vld [vmem:[#allocation4 + $0x38] sm:$0xff]  }
  0x4e   :  { %3190 = vmatmul.mubr.bf16.gmra.mrb[4].mxu1 %v233_v31  ;;  %3209 = vmatprep.subr.bf16.mxu1 %v3709_v30  ;;  %v4019_v31 = vld [vmem:[#allocation2 + $0x50] ss:$0 sps:$4 sm:$0x11]  }
  0x4f   :  { %3334 = vmatmul.mubr.bf16.gmra.mrb[4].mxu0 %v1262_v38  ;;  %3193 = vmatprep.mubr.bf16.mxu1 %v241_v39  ;;  %v274_v39 = vshrl.u32 %v4013_v21, 16  ;;  %v1309_v62 = vrot.slane %v1307_v50, 1  ;;  %v3734_v50 = vld [vmem:[#allocation4 + $0x198] sm:$0xff]  }
  0x50   :  { %3354 = vmatpush3.bf16.msra.mxu0 %v3703_v19  ;;  %3337 = vmatprep.mubr.bf16.mxu0 %v1270_v40  ;;  %v260_v19 = vor.u32 %v258_v2, %v256_v59  ;;  %v278_v40 = vshll.u32 %v4019_v31, 16  ;;  %v3731_v2 = vld [vmem:[#allocation4 + $0x80] sm:$0xff]  }
  0x51   :  { %3355 = vmatprep.subr.bf16.mxu0 %v3707_v32  ;;  %3210 = vmatpush3.bf16.msra.mxu1 %v3709_v30  ;;  %v270_v30 = vshll.u32 %v4013_v21, 16 }
  0x52   :  { %3211 = vmatprep.subr.bf16.mxu1 %v3711_v43  ;;  %v265_v37 = vsel %vm197_vm0, %v260_v19, %v264_v3  ;;  %v280_v58 = vrot.slane %v278_v40, 1  ;;  %v3730_v19 = vld [vmem:[#allocation4 + $0x188] sm:$0xff]   ;;  %v663_v40 = vrot.slane %v4013_v21, 1 }
  0x53   :  { %v272_v38 = vrot.slane %v270_v30, 1  ;;  %v2804_v30 = vcombine.low %v624_v22, %v3926_v13  ;;  %v3766_v22 = vld [vmem:[#allocation4 + $0x1f0] sm:$0xff]  }
  0x54   :  { %3356 = vmatpush3.bf16.msra.mxu0 %v3707_v32  ;;  %v1297_v32 = vor.u32 %v1295_v26, %v1293_v20  ;;  %v3733_v20 = vld [vmem:[#allocation4 + $0x88] sm:$0xff]   ;;  %v4055_v26 = vsel %vm645_vm1, %v651_v10, %v653_v17 }
  0x55   :  { %3357 = vmatprep.subr.bf16.mxu0 %v3712_v55  ;;  %3212 = vmatpush3.bf16.msra.mxu1 %v3711_v43  ;;  %v1301_v43 = vrot.slane %v1299_v34, 1  ;;  %v273_v49 = vsel %vm197_vm0, %v268_v29, %v272_v38  ;;  %v276_v57 = vor.u32 %v274_v39, %v272_v38  ;;  %v1530_v29 = vrot.slane %v3962_v60, 1  ;;  %v3735_v38 = vld [vmem:[#allocation4 + $0x90] sm:$0xff]  }
  0x56   :  { %3194 = vmatmul.mubr.bf16.gmra.mrb[8].mxu1 %v249_v1  ;;  %3213 = vmatprep.subr.bf16.mxu1 %v3716_v0  ;;  %v3729_v1 = vld [vmem:[#allocation4 + $0x180] sm:$0xff]   ;;  %v659_v34 = vrot.slane %v3992_v45, 1  ;;  %v646_v60 = vrot.slane %v2804_v30, 1 }
  0x57   :  { %3338 = vmatmul.mubr.bf16.gmra.mrb[8].mxu0 %v1278_v6  ;;  %3197 = vmatprep.mubr.bf16.mxu1 %v257_v8  ;;  %v1302_v52 = vsel %vm197_vm0, %v1297_v32, %v1301_v43  ;;  %v1305_v61 = vor.u32 %v1303_v46, %v1301_v43  ;;  %v281_v3 = vsel %vm197_vm0, %v276_v57, %v280_v58  ;;  %v1528_v6 = vrot.slane %v3954_v47, 1  ;;  %v3738_v57 = vld [vmem:[#allocation4 + $0xa0] sm:$0xff]  }
  0x58   :  { %3358 = vmatpush3.bf16.msra.mxu0 %v3712_v55  ;;  %3341 = vmatprep.mubr.bf16.mxu0 %v1286_v9  ;;  %v1502_v55 = vld [vmem:[#allocation2 + $0x8] sm:$0xe]  ;;  %v647_v8 = vrot.slane %v3931_v15, 1  ;;  %v649_v9 = vrot.slane %v3941_v25, 1  ;;  %v655_v47 = vrot.slane %v3971_v7, 1  ;;  %v665_v43 = vrot.slane %v4019_v31, 1 }
  0x59   :  { %3214 = vmatpush3.bf16.msra.mxu1 %v3716_v0  ;;  %3359 = vmatprep.subr.bf16.mxu0 %v3718_v11  ;;  %v2850_v59 = vcombine.low %v1502_v55, %v3933_v18  ;;  %v1524_v0 = vrot.slane %v3939_v24, 1  ;;  %v1310_v5 = vsel %vm197_vm0, %v1305_v61, %v1309_v62  ;;  %v1526_v24 = vrot.slane %v3945_v33, 1  ;;  %v3742_v62 = vld [vmem:[#allocation4 + $0xb0] sm:$0xff]   ;;  %v3763_v30 = vld [vmem:[#allocation2 + $0x48] sm:$0xff]  }
  0x5a   :  { %3215 = vmatprep.subr.bf16.mxu1 %v3719_v16  ;;  %v4050_v33 = vsel %vm645_vm1, %v649_v9, %v651_v10  ;;  %v4062_v32 = vsel %vm645_vm1, %v653_v17, %v655_v47  ;;  %v1531_v46 = vsel %vm645_vm1, %v1528_v6, %v1530_v29  ;;  %v1534_v31 = vrot.slane %v3985_v36, 1  ;;  %v3760_v10 = vld [vmem:[#allocation4 + $0x1e0] sm:$0xff]   ;;  %v4111_v17 = vld [vmem:[#allocation2 + $0x14] sm:$0xf] }
  0x5b   :  { %v1523_v63 = vrot.slane %v2850_v59, 1  ;;  %v1536_v55 = vrot.slane %v3995_v48, 1  ;;  %v3739_v59 = vld [vmem:[#allocation4 + $0x1a8] sm:$0xff]   ;;  %v1538_v36 = vrot.slane %v4005_v4, 1  ;;  %v3741_v48 = vld [vmem:[#allocation4 + $0x1b0] sm:$0xff]   ;;  %v1540_v61 = vrot.slane %v4015_v23, 1 }
  0x5c   :  { %3360 = vmatpush3.bf16.msra.mxu0 %v3718_v11  ;;  %v1527_v11 = vsel %vm645_vm1, %v1524_v0, %v1526_v24  ;;  %v1542_v4 = vrot.slane %v4025_v41, 1  ;;  %v3748_v23 = vld [vmem:[#allocation4 + $0x1c0] sm:$0xff]   ;;  %v3750_v41 = vld [vmem:[#allocation2 + $0x20] sm:$0xff]  }
  0x5d   :  { %3216 = vmatpush3.bf16.msra.mxu1 %v3719_v16  ;;  %3361 = vmatprep.subr.bf16.mxu0 %v3720_v27  ;;  %v1525_v18 = vsel %vm645_vm1, %v1523_v63, %v1524_v0  ;;  %v4045_v16 = vsel %vm645_vm1, %v647_v8, %v649_v9  ;;  %v1539_v63 = vsel %vm645_vm1, %v1536_v55, %v1538_v36  ;;  %v3743_v0 = vld [vmem:[#allocation4 + $0x1b8] sm:$0xff]  }
  0x5e   :  { %3198 = vmatmul.mubr.bf16.gmra.mrb[12].mxu1 %v265_v37  ;;  %3217 = vmatprep.subr.bf16.mxu1 %v3724_v35  ;;  %v661_v37 = vrot.slane %v3999_v53, 1  ;;  %v3759_v9 = vld [vmem:[#allocation4 + $0xd8] sm:$0xff]  }
  0x5f   :  { %3342 = vmatmul.mubr.bf16.gmra.mrb[12].mxu0 %v1294_v42  ;;  %3201 = vmatprep.mubr.bf16.mxu1 %v273_v49  ;;  %v4078_v42 = vsel %vm645_vm1, %v646_v60, %v647_v8  ;;  %v3756_v8 = vld [vmem:[#allocation4 + $0x1d8] sm:$0xff]  }
  0x60   :  { %3345 = vmatprep.mubr.bf16.mxu0 %v1302_v52  ;;  %3362 = vmatpush3.bf16.msra.mxu0 %v3720_v27  ;;  %v657_v27 = vrot.slane %v3980_v28, 1  ;;  %v4074_v39 = vsel %vm645_vm1, %v659_v34, %v661_v37  ;;  %v3736_v52 = vld [vmem:[#allocation4 + $0x98] sm:$0xff]  }
  0x61   :  { %3218 = vmatpush3.bf16.msra.mxu1 %v3724_v35  ;;  %3363 = vmatprep.subr.bf16.mxu0 %v3726_v51  ;;  %v4121_v60 = vld [vmem:[#allocation2 + $0x20] sm:$0xff]  }
  0x62   :  { %3219 = vmatprep.subr.bf16.mxu1 %v3727_v54  ;;  %v4066_v35 = vsel %vm645_vm1, %v655_v47, %v657_v27  ;;  %v4071_v13 = vsel %vm645_vm1, %v657_v27, %v659_v34  ;;  %v3770_v34 = vld [vmem:[#allocation4 + $0x1f8] sm:$0xff]  }
  0x64   :  { %3364 = vmatpush3.bf16.msra.mxu0 %v3726_v51  ;;  %v4087_v51 = vsel %vm645_vm1, %v663_v40, %v665_v43  ;;  %v3769_v43 = vld [vmem:[#allocation2 + $0x58] sm:$0xff]  }
  0x65   :  { %3220 = vmatpush3.bf16.msra.mxu1 %v3727_v54  ;;  %3385 = vmatprep.subr.bf16.mxu0 %v3729_v1  ;;  %v3737_v54 = vld [vmem:[#allocation4 + $0x1a0] sm:$0xff]  }
  0x66   :  { %3202 = vmatmul.mubr.bf16.gmra.mrb[16].mxu1 %v281_v3  ;;  %3241 = vmatprep.subr.bf16.mxu1 %v3731_v2  ;;  %v3746_v3 = vld [vmem:[#allocation2 + $0x10] sm:$0xff]  }
  0x67   :  { %3346 = vmatmul.mubr.bf16.gmra.mrb[16].mxu0 %v1310_v5  ;;  %3221 = vmatprep.mubr.bf16.mxu1 %v3929_v14  ;;  %v1529_v14 = vsel %vm645_vm1, %v1526_v24, %v1528_v6  ;;  %v3754_v5 = vld [vmem:[#allocation4 + $0xc8] sm:$0xff]   ;;  %v3752_v24 = vld [vmem:[#allocation2 + $0x28] sm:$0xff]  }
  0x68   :  { %3365 = vmatprep.mubr.bf16.mxu0 %v1525_v18  ;;  %v3753_v18 = vld [vmem:[#allocation4 + $0x1d0] sm:$0xff]   ;;  %v3755_v6 = vld [vmem:[#allocation2 + $0x30] sm:$0xff]  }
  0x6e   :  { %3222 = vmatmul.mubr.bf16.vlgmr.msra.gmra.mrb[0].mxu1 %v3931_v15  ;;  %v3732_v15 = vld [vmem:[#allocation4 + $0x190] sm:$0xff]  }
  0x6f   :  { %3366 = vmatmul.mubr.bf16.vlgmr.msra.gmra.mrb[0].mxu0 %v1527_v11  ;;  %3225 = vmatprep.mubr.bf16.mxu1 %v3941_v25  ;;  %v1532_v25 = vrot.slane %v3976_v12, 1  ;;  %v4083_v12 = vsel %vm645_vm1, %v661_v37, %v663_v40  ;;  %v3762_v11 = vld [vmem:[#allocation4 + $0xe0] sm:$0xff]  }
  0x70   :  { %3386 = vmatpush3.bf16.msra.mxu0 %v3729_v1  ;;  %3369 = vmatprep.mubr.bf16.mxu0 %v1529_v14  ;;  %v3751_v1 = vld [vmem:[#allocation4 + $0xc0] sm:$0xff]   ;;  %v3761_v14 = vld [vmem:[#allocation2 + $0x40] sm:$0xff]  }
  0x71   :  { %3387 = vmatprep.subr.bf16.mxu0 %v3730_v19  ;;  %3242 = vmatpush3.bf16.msra.mxu1 %v3731_v2  ;;  %v1533_v49 = vsel %vm645_vm1, %v1530_v29, %v1532_v25  ;;  %v1535_v58 = vsel %vm645_vm1, %v1532_v25, %v1534_v31  ;;  %v1543_v2 = vsel %vm645_vm1, %v1540_v61, %v1542_v4  ;;  %v3768_v29 = vld [vmem:[#allocation4 + $0xf0] sm:$0xff]   ;;  %v3771_v25 = vld [vmem:[#allocation4 + $0xf8] sm:$0xff]   ;;  %v3777_v40 = vld [vmem:[#allocation4 + $0x200] sm:$0xff]  }
  0x72   :  { %3243 = vmatprep.subr.bf16.mxu1 %v3733_v20 }
  0x74   :  { %3388 = vmatpush3.bf16.msra.mxu0 %v3730_v19  ;;  %v3758_v19 = vld [vmem:[#allocation2 + $0x38] sm:$0xff]  }
  0x75   :  { %3389 = vmatprep.subr.bf16.mxu0 %v3732_v15  ;;  %3244 = vmatpush3.bf16.msra.mxu1 %v3733_v20  ;;  %v3765_v20 = vld [vmem:[#allocation4 + $0xe8] sm:$0xff]  }
  0x76   :  { %3226 = vmatmul.mubr.bf16.gmra.mrb[4].mxu1 %v3951_v44  ;;  %3245 = vmatprep.subr.bf16.mxu1 %v3735_v38  ;;  %v1537_v44 = vsel %vm645_vm1, %v1534_v31, %v1536_v55 }
  0x77   :  { %3370 = vmatmul.mubr.bf16.gmra.mrb[4].mxu0 %v1531_v46  ;;  %3229 = vmatprep.mubr.bf16.mxu1 %v3960_v56  ;;  %v3740_v56 = vld [vmem:[#allocation4 + $0xa8] sm:$0xff]   ;;  %v3772_v46 = vld [vmem:[#allocation2 + $0x8] sm:$0xff]  }
  0x78   :  { %3390 = vmatpush3.bf16.msra.mxu0 %v3732_v15  ;;  %3373 = vmatprep.mubr.bf16.mxu0 %v1533_v49 }
  0x79   :  { %3391 = vmatprep.subr.bf16.mxu0 %v3734_v50  ;;  %3246 = vmatpush3.bf16.msra.mxu1 %v3735_v38 }
  0x7a   :  { %3247 = vmatprep.subr.bf16.mxu1 %v3736_v52 }
  0x7c   :  { %3392 = vmatpush3.bf16.msra.mxu0 %v3734_v50  ;;  %v2124_v50 = vshrl.u32 %v4121_v60, 16 }
  0x7d   :  { %3393 = vmatprep.subr.bf16.mxu0 %v3737_v54  ;;  %3248 = vmatpush3.bf16.msra.mxu1 %v3736_v52 }
  0x7e   :  { %3230 = vmatmul.mubr.bf16.gmra.mrb[8].mxu1 %v3971_v7  ;;  %3249 = vmatprep.subr.bf16.mxu1 %v3738_v57  ;;  %v1541_v7 = vsel %vm645_vm1, %v1538_v36, %v1540_v61  ;;  %v3778_v61 = vld [vmem:[#allocation4 + $0x208] sm:$0xff]  }
  0x7f   :  { %3374 = vmatmul.mubr.bf16.gmra.mrb[8].mxu0 %v1535_v58  ;;  %3233 = vmatprep.mubr.bf16.mxu1 %v3980_v28  ;;  %v3744_v28 = vld [vmem:[#allocation4 + $0xb8] sm:$0xff]  }
  0x80   :  { %3394 = vmatpush3.bf16.msra.mxu0 %v3737_v54  ;;  %3377 = vmatprep.mubr.bf16.mxu0 %v1537_v44  ;;  %v4131_v54 = vld [vmem:[#allocation2 + $0x30] sm:$0xff]   ;;  %v4133_v44 = vld [vmem:[#allocation2 + $0x38] sm:$0xff]  }
  0x81   :  { %3250 = vmatpush3.bf16.msra.mxu1 %v3738_v57  ;;  %3395 = vmatprep.subr.bf16.mxu0 %v3739_v59  ;;  %v2136_v36 = vshll.u32 %v4131_v54, 16 }
  0x82   :  { %3251 = vmatprep.subr.bf16.mxu1 %v3740_v56 }
  0x84   :  { %3396 = vmatpush3.bf16.msra.mxu0 %v3739_v59  ;;  %v3775_v59 = vld [vmem:[#allocation2 + $0x10] sm:$0xff]  }
  0x85   :  { %3252 = vmatpush3.bf16.msra.mxu1 %v3740_v56  ;;  %3397 = vmatprep.subr.bf16.mxu0 %v3741_v48  ;;  %v3779_v56 = vld [vmem:[#allocation2 + $0x18] sm:$0xff]  }
  0x86   :  { %3234 = vmatmul.mubr.bf16.gmra.mrb[12].mxu1 %v3992_v45  ;;  %3253 = vmatprep.subr.bf16.mxu1 %v3742_v62  ;;  %v3747_v45 = vld [vmem:[#allocation2 + $0x18] sm:$0xff]  }
  0x87   :  { %3378 = vmatmul.mubr.bf16.gmra.mrb[12].mxu0 %v1539_v63  ;;  %3237 = vmatprep.mubr.bf16.mxu1 %v3999_v53  ;;  %v3749_v53 = vld [vmem:[#allocation4 + $0x1c8] sm:$0xff]   ;;  %v2140_v63 = vshrl.u32 %v4131_v54, 16 }
  0x88   :  { %3381 = vmatprep.mubr.bf16.mxu0 %v1541_v7  ;;  %3398 = vmatpush3.bf16.msra.mxu0 %v3741_v48  ;;  %v2144_v7 = vshll.u32 %v4133_v44, 16 }
  0x89   :  { %3254 = vmatpush3.bf16.msra.mxu1 %v3742_v62  ;;  %3399 = vmatprep.subr.bf16.mxu0 %v3743_v0 }
  0x8a   :  { %3255 = vmatprep.subr.bf16.mxu1 %v3744_v28 }
  0x8c   :  { %3400 = vmatpush3.bf16.msra.mxu0 %v3743_v0  ;;  %v2138_v0 = vrot.slane %v2136_v36, 1 }
  0x8d   :  { %3256 = vmatpush3.bf16.msra.mxu1 %v3744_v28  ;;  %3421 = vmatprep.subr.bf16.mxu0 %v3748_v23  ;;  %v4141_v28 = vld [vmem:[#allocation2 + $0x40] sm:$0xff]  }
  0x8e   :  { %3238 = vmatmul.mubr.bf16.gmra.mrb[16].mxu1 %v4013_v21  ;;  %3277 = vmatprep.subr.bf16.mxu1 %v3751_v1  ;;  %v3757_v21 = vld [vmem:[#allocation4 + $0xd0] sm:$0xff]  }
  0x8f   :  { %3382 = vmatmul.mubr.bf16.gmra.mrb[16].mxu0 %v1543_v2  ;;  %3257 = vmatprep.mubr.bf16.mxu1 %v4078_v42  ;;  %v4123_v42 = vld [vmem:[#allocation2 + $0x28] sm:$0xff]   ;;  %v2146_v2 = vrot.slane %v2144_v7, 1  ;;  %v2403_v7 = vrot.slane %v4121_v60, 1 }
  0x90   :  { %3401 = vmatprep.mubr.bf16.mxu0 %v3746_v3  ;;  %v2128_v52 = vshll.u32 %v4123_v42, 16  ;;  %v4143_v3 = vld [vmem:[#allocation2 + $0x48] sm:$0xff]  }
  0x92   :  { %v2130_v58 = vrot.slane %v2128_v52, 1 }
  0x96   :  { %3258 = vmatmul.mubr.bf16.vlgmr.msra.gmra.mrb[0].mxu1 %v4045_v16  ;;  %v2013_v16 = vld [vmem:[#allocation2 + $0x10] sm:$0xf] }
  0x97   :  { %3402 = vmatmul.mubr.bf16.vlgmr.msra.gmra.mrb[0].mxu0 %v3747_v45  ;;  %3261 = vmatprep.mubr.bf16.mxu1 %v4050_v33  ;;  %v3764_v33 = vld [vmem:[#allocation4 + $0x1e8] sm:$0xff]   ;;  %v2877_v47 = vcombine.low %v2013_v16, %v4111_v17  ;;  %v3781_v45 = vld [vmem:[#allocation2 + $0x20] sm:$0xff]   ;;  %v3789_v16 = vld [vmem:[#allocation4 + $0x220] sm:$0xff]  }
  0x98   :  { %3422 = vmatpush3.bf16.msra.mxu0 %v3748_v23  ;;  %3405 = vmatprep.mubr.bf16.mxu0 %v3750_v41  ;;  %v3783_v23 = vld [vmem:[#allocation4 + $0x210] sm:$0xff]   ;;  %v2152_v41 = vshll.u32 %v4141_v28, 16 }
  0x99   :  { %3423 = vmatprep.subr.bf16.mxu0 %v3749_v53  ;;  %3278 = vmatpush3.bf16.msra.mxu1 %v3751_v1  ;;  %v2107_v27 = vshll.u32 %v2877_v47, 16  ;;  %v2105_v15 = vshrl.u32 %v2877_v47, 16  ;;  %v2142_v1 = vor.u32 %v2140_v63, %v2138_v0  ;;  %v3787_v47 = vld [vmem:[#allocation2 + $0x30] sm:$0xff]  }
  0x9a   :  { %3279 = vmatprep.subr.bf16.mxu1 %v3754_v5 }
  0x9c   :  { %3424 = vmatpush3.bf16.msra.mxu0 %v3749_v53  ;;  %v3784_v53 = vld [vmem:[#allocation2 + $0x28] sm:$0xff]  }
  0x9d   :  { %3425 = vmatprep.subr.bf16.mxu0 %v3753_v18  ;;  %3280 = vmatpush3.bf16.msra.mxu1 %v3754_v5 }
  0x9e   :  { %3262 = vmatmul.mubr.bf16.gmra.mrb[4].mxu1 %v4055_v26  ;;  %3281 = vmatprep.subr.bf16.mxu1 %v3757_v21  ;;  %v4116_v26 = vld [vmem:[#allocation2 + $0x18] sm:$0xff]  }
  0x9f   :  { %3406 = vmatmul.mubr.bf16.gmra.mrb[4].mxu0 %v3752_v24  ;;  %3265 = vmatprep.mubr.bf16.mxu1 %v4062_v32  ;;  %v3767_v32 = vld [vmem:[#allocation2 + $0x50] sm:$0xff]   ;;  %v2112_v37 = vshll.u32 %v4116_v26, 16  ;;  %v2116_v49 = vshrl.u32 %v4116_v26, 16  ;;  %v3786_v24 = vld [vmem:[#allocation4 + $0x218] sm:$0xff]  }
  0xa0   :  { %3426 = vmatpush3.bf16.msra.mxu0 %v3753_v18  ;;  %3409 = vmatprep.mubr.bf16.mxu0 %v3755_v6  ;;  %v2148_v18 = vshrl.u32 %v4133_v44, 16  ;;  %v2156_v6 = vshrl.u32 %v4141_v28, 16 }
  0xa1   :  { %3427 = vmatprep.subr.bf16.mxu0 %v3756_v8  ;;  %3282 = vmatpush3.bf16.msra.mxu1 %v3757_v21  ;;  %v2114_v38 = vrot.slane %v2112_v37, 1  ;;  %v2147_v21 = vsel %vm197_vm0, %v2142_v1, %v2146_v2 }
  0xa2   :  { %3283 = vmatprep.subr.bf16.mxu1 %v3759_v9 }
  0xa3   :  { %v2118_v55 = vor.u32 %v2116_v49, %v2114_v38 }
  0xa4   :  { %3428 = vmatpush3.bf16.msra.mxu0 %v3756_v8  ;;  %v2160_v8 = vshll.u32 %v4143_v3, 16 }
  0xa5   :  { %3429 = vmatprep.subr.bf16.mxu0 %v3760_v10  ;;  %3284 = vmatpush3.bf16.msra.mxu1 %v3759_v9  ;;  %v2154_v9 = vrot.slane %v2152_v41, 1 }
  0xa6   :  { %3266 = vmatmul.mubr.bf16.gmra.mrb[8].mxu1 %v4066_v35  ;;  %3285 = vmatprep.subr.bf16.mxu1 %v3762_v11  ;;  %v2109_v35 = vrot.slane %v2107_v27, 1 }
  0xa7   :  { %3410 = vmatmul.mubr.bf16.gmra.mrb[8].mxu0 %v3758_v19  ;;  %3269 = vmatprep.mubr.bf16.mxu1 %v4071_v13  ;;  %v2158_v19 = vor.u32 %v2156_v6, %v2154_v9 }
  0xa8   :  { %3430 = vmatpush3.bf16.msra.mxu0 %v3760_v10  ;;  %3413 = vmatprep.mubr.bf16.mxu0 %v3761_v14  ;;  %v2110_v13 = vor.u32 %v2109_v35, %v2105_v15  ;;  %v4151_v10 = vld [vmem:[#allocation2 + $0x50] sm:$0xff]   ;;  %v2162_v14 = vrot.slane %v2160_v8, 1 }
  0xa9   :  { %3286 = vmatpush3.bf16.msra.mxu1 %v3762_v11  ;;  %3431 = vmatprep.subr.bf16.mxu0 %v3764_v33  ;;  %v2150_v11 = vor.u32 %v2148_v18, %v2146_v2  ;;  %v2415_v63 = vrot.slane %v4151_v10, 1 }
  0xaa   :  { %3287 = vmatprep.subr.bf16.mxu1 %v3765_v20 }
  0xab   :  { %v2155_v27 = vsel %vm197_vm0, %v2150_v11, %v2154_v9 }
  0xac   :  { %3432 = vmatpush3.bf16.msra.mxu0 %v3764_v33  ;;  %v4153_v33 = vld [vmem:[#allocation2 + $0x58] sm:$0xff]  }
  0xad   :  { %3288 = vmatpush3.bf16.msra.mxu1 %v3765_v20  ;;  %3433 = vmatprep.subr.bf16.mxu0 %v3766_v22  ;;  %v3790_v20 = vld [vmem:[#allocation2 + $0x38] sm:$0xff]   ;;  %v2176_v15 = vshll.u32 %v4153_v33, 16 }
  0xae   :  { %3270 = vmatmul.mubr.bf16.gmra.mrb[12].mxu1 %v4074_v39  ;;  %3289 = vmatprep.subr.bf16.mxu1 %v3768_v29  ;;  %v2120_v39 = vshll.u32 %v4121_v60, 16  ;;  %v2409_v60 = vrot.slane %v4133_v44, 1 }
  0xaf   :  { %3414 = vmatmul.mubr.bf16.gmra.mrb[12].mxu0 %v3763_v30  ;;  %3273 = vmatprep.mubr.bf16.mxu1 %v4083_v12  ;;  %v2115_v12 = vsel %vm197_vm0, %v2110_v13, %v2114_v38  ;;  %v2163_v30 = vsel %vm197_vm0, %v2158_v19, %v2162_v14  ;;  %v3795_v13 = vld [vmem:[#allocation4 + $0x230] sm:$0xff]  }
  0xb0   :  { %3417 = vmatprep.mubr.bf16.mxu0 %v3767_v32  ;;  %3434 = vmatpush3.bf16.msra.mxu0 %v3766_v22  ;;  %v2122_v31 = vrot.slane %v2120_v39, 1  ;;  %v2168_v22 = vshll.u32 %v4151_v10, 16  ;;  %v3794_v32 = vld [vmem:[#allocation4 + $0x228] sm:$0xff]   ;;  %v3796_v39 = vld [vmem:[#allocation2 + $0x48] sm:$0xff]  }
  0xb1   :  { %3290 = vmatpush3.bf16.msra.mxu1 %v3768_v29  ;;  %3435 = vmatprep.subr.bf16.mxu0 %v3770_v34  ;;  %v2164_v29 = vshrl.u32 %v4143_v3, 16 }
  0xb2   :  { %3291 = vmatprep.subr.bf16.mxu1 %v3771_v25  ;;  %v2126_v57 = vor.u32 %v2124_v50, %v2122_v31  ;;  %v2123_v48 = vsel %vm197_vm0, %v2118_v55, %v2122_v31  ;;  %v2170_v35 = vrot.slane %v2168_v22, 1  ;;  %v3800_v31 = vld [vmem:[#allocation4 + $0x238] sm:$0xff]  }
  0xb3   :  { %v2166_v37 = vor.u32 %v2164_v29, %v2162_v14 }
  0xb4   :  { %3436 = vmatpush3.bf16.msra.mxu0 %v3770_v34  ;;  %v2131_v62 = vsel %vm197_vm0, %v2126_v57, %v2130_v58  ;;  %v2172_v34 = vshrl.u32 %v4151_v10, 16 }
  0xb5   :  { %3292 = vmatpush3.bf16.msra.mxu1 %v3771_v25  ;;  %3457 = vmatprep.subr.bf16.mxu0 %v3777_v40  ;;  %v3799_v25 = vld [vmem:[#allocation2 + $0x60] ss:$0 sps:$4 sm:$0x11]   ;;  %v2171_v49 = vsel %vm197_vm0, %v2166_v37, %v2170_v35 }
  0xb6   :  { %3274 = vmatmul.mubr.bf16.gmra.mrb[16].mxu1 %v4087_v51  ;;  %3493 = vmatprep.subr.bf16.mxu1 %v3777_v40  ;;  %v2132_v51 = vshrl.u32 %v4123_v42, 16  ;;  %v2174_v38 = vor.u32 %v2172_v34, %v2170_v35  ;;  %v2184_v50 = vshll.u32 %v3799_v25, 16  ;;  %v2419_v2 = vrot.slane %v3799_v25, 1 }
  0xb7   :  { %3418 = vmatmul.mubr.bf16.gmra.mrb[16].mxu0 %v3769_v43  ;;  %3293 = vmatprep.mubr.bf16.mxu1 %v3772_v46  ;;  %v3792_v43 = vld [vmem:[#allocation2 + $0x40] sm:$0xff]   ;;  %v2379_v46 = vld [vmem:[#allocation2 + $0x10] sm:$0xe] }
  0xb8   :  { %3437 = vmatprep.mubr.bf16.mxu0 %v2115_v12  ;;  %v2134_v4 = vor.u32 %v2132_v51, %v2130_v58  ;;  %v2180_v12 = vshrl.u32 %v4153_v33, 16  ;;  %v2896_v55 = vcombine.low %v2379_v46, %v4111_v17  ;;  %v2186_v58 = vrot.slane %v2184_v50, 1  ;;  %v3798_v51 = vld [vmem:[#allocation2 + $0x50] sm:$0xff]  }
  0xba   :  { %v2139_v5 = vsel %vm197_vm0, %v2134_v4, %v2138_v0  ;;  %v2400_v36 = vrot.slane %v2896_v55, 1  ;;  %v2405_v0 = vrot.slane %v4123_v42, 1 }
  0xbc   :  { %v2406_v1 = vsel %vm645_vm1, %v2403_v7, %v2405_v0 }
  0xbe   :  { %3294 = vmatmul.mubr.bf16.vlgmr.msra.gmra.mrb[0].mxu1 %v3775_v59  ;;  %v2411_v59 = vrot.slane %v4141_v28, 1 }
  0xbf   :  { %3438 = vmatmul.mubr.bf16.vlgmr.msra.gmra.mrb[0].mxu0 %v2123_v48  ;;  %3297 = vmatprep.mubr.bf16.mxu1 %v3779_v56  ;;  %v2413_v56 = vrot.slane %v4143_v3, 1  ;;  %v2401_v48 = vrot.slane %v4116_v26, 1  ;;  %v2417_v26 = vrot.slane %v4153_v33, 1  ;;  %v2407_v3 = vrot.slane %v4131_v54, 1 }
  0xc0   :  { %3458 = vmatpush3.bf16.msra.mxu0 %v3777_v40  ;;  %3441 = vmatprep.mubr.bf16.mxu0 %v2131_v62  ;;  %v2412_v41 = vsel %vm645_vm1, %v2409_v60, %v2411_v59 }
  0xc1   :  { %3459 = vmatprep.subr.bf16.mxu0 %v3778_v61  ;;  %3501 = vmatpush3.bf16.msra.mxu1 %v3777_v40  ;;  %v2178_v40 = vrot.slane %v2176_v15, 1  ;;  %v2402_v62 = vsel %vm645_vm1, %v2400_v36, %v2401_v48  ;;  %v2416_v28 = vsel %vm645_vm1, %v2413_v56, %v2415_v63  ;;  %v2404_v4 = vsel %vm645_vm1, %v2401_v48, %v2403_v7 }
  0xc2   :  { %3494 = vmatprep.subr.bf16.mxu1 %v3778_v61  ;;  %v2408_v42 = vsel %vm645_vm1, %v2405_v0, %v2407_v3 }
  0xc3   :  { %v2179_v52 = vsel %vm197_vm0, %v2174_v38, %v2178_v40  ;;  %v2182_v57 = vor.u32 %v2180_v12, %v2178_v40 }
  0xc4   :  { %3460 = vmatpush3.bf16.msra.mxu0 %v3778_v61 }
  0xc5   :  { %3461 = vmatprep.subr.bf16.mxu0 %v3783_v23  ;;  %3502 = vmatpush3.bf16.msra.mxu1 %v3778_v61  ;;  %v2187_v17 = vsel %vm197_vm0, %v2182_v57, %v2186_v58  ;;  %v2414_v61 = vsel %vm645_vm1, %v2411_v59, %v2413_v56  ;;  %v4204_v59 = vld [vmem:[%s4251_s2] ss:$0 sm:$0xff]  ;;  %s3878_s2 = smov [#allocation7]  }
  0xc6   :  { %3298 = vmatmul.mubr.bf16.gmra.mrb[4].mxu1 %v3781_v45  ;;  %3495 = vmatprep.subr.bf16.mxu1 %v3783_v23  ;;  %v2420_v45 = vsel %vm645_vm1, %v2417_v26, %v2419_v2  ;;  %s2744_s12 = sshll.u32 %s3878_s2, 4  ;;  %s2745_s12 = int_to_ptr.vmem [resolvable:$true] %s2744_s12 }
  0xc7   :  { %3442 = vmatmul.mubr.bf16.gmra.mrb[4].mxu0 %v2139_v5  ;;  %3301 = vmatprep.mubr.bf16.mxu1 %v3784_v53  ;;  %v2410_v53 = vsel %vm645_vm1, %v2407_v3, %v2409_v60  ;;  %s3846_s13 = scalar_lea.vmem %s2745_s12, 1280  ;;  %p3851_p3 = scmp.lt.s32.totalorder %s2745_s12, %s2745_s12 }
  0xc8   :  { %3462 = vmatpush3.bf16.msra.mxu0 %v3783_v23  ;;  %3445 = vmatprep.mubr.bf16.mxu0 %v2147_v21  ;;  %p3847_p2 = scmp.ne.s32.totalorder %s2745_s12, %s3846_s13  ;;  %p3852_p4 = scmp.lt.s32.totalorder %s3846_s13, %s3846_s13 }
  0xc9   :  { %3463 = vmatprep.subr.bf16.mxu0 %v3786_v24  ;;  %3503 = vmatpush3.bf16.msra.mxu1 %v3783_v23  ;;  %v2418_v23 = vsel %vm645_vm1, %v2415_v63, %v2417_v26 }
  0xca   :  { %3496 = vmatprep.subr.bf16.mxu1 %v3786_v24  ;;  %p3853_p5 = por %p3852_p4, %p3851_p3 }
  0xcc   :  { %3464 = vmatpush3.bf16.msra.mxu0 %v3786_v24  ;;  %p3854_p6 = pnand %p3853_p5, %p3847_p2 }
  0xcd   :  { %3465 = vmatprep.subr.bf16.mxu0 %v3789_v16  ;;  %3504 = vmatpush3.bf16.msra.mxu1 %v3786_v24 }
  0xce   :  { %3302 = vmatmul.mubr.bf16.gmra.mrb[8].mxu1 %v3787_v47  ;;  %3497 = vmatprep.subr.bf16.mxu1 %v3789_v16 }
  0xcf   :  { %3446 = vmatmul.mubr.bf16.gmra.mrb[8].mxu0 %v2155_v27  ;;  %3305 = vmatprep.mubr.bf16.mxu1 %v3790_v20 }
  0xd0   :  { %3466 = vmatpush3.bf16.msra.mxu0 %v3789_v16  ;;  %3449 = vmatprep.mubr.bf16.mxu0 %v2163_v30 }
  0xd1   :  { %3505 = vmatpush3.bf16.msra.mxu1 %v3789_v16  ;;  %3467 = vmatprep.subr.bf16.mxu0 %v3794_v32 }
  0xd2   :  { %3498 = vmatprep.subr.bf16.mxu1 %v3794_v32 }
  0xd4   :  { %3468 = vmatpush3.bf16.msra.mxu0 %v3794_v32 }
  0xd5   :  { %3506 = vmatpush3.bf16.msra.mxu1 %v3794_v32  ;;  %3469 = vmatprep.subr.bf16.mxu0 %v3795_v13 }
  0xd6   :  { %3306 = vmatmul.mubr.bf16.gmra.mrb[12].mxu1 %v3792_v43  ;;  %3499 = vmatprep.subr.bf16.mxu1 %v3795_v13 }
  0xd7   :  { %3450 = vmatmul.mubr.bf16.gmra.mrb[12].mxu0 %v2171_v49  ;;  %3309 = vmatprep.mubr.bf16.mxu1 %v3796_v39 }
  0xd8   :  { %3453 = vmatprep.mubr.bf16.mxu0 %v2179_v52  ;;  %3470 = vmatpush3.bf16.msra.mxu0 %v3795_v13 }
  0xd9   :  { %3507 = vmatpush3.bf16.msra.mxu1 %v3795_v13  ;;  %3471 = vmatprep.subr.bf16.mxu0 %v3800_v31 }
  0xda   :  { %3500 = vmatprep.subr.bf16.mxu1 %v3800_v31 }
  0xdc   :  { %3472 = vmatpush3.bf16.msra.mxu0 %v3800_v31 }
  0xdd   :  { %3508 = vmatpush3.bf16.msra.mxu1 %v3800_v31 }
  0xde   :  { %3310 = vmatmul.mubr.bf16.gmra.mrb[16].mxu1 %v3798_v51 }
  0xdf   :  { %3454 = vmatmul.mubr.bf16.gmra.mrb[16].mxu0 %v2187_v17  ;;  %3485 = vmatprep.mubr.bf16.mxu1 %v2414_v61 }
  0xe0   :  { %3473 = vmatprep.mubr.bf16.mxu0 %v2402_v62 }
  0xe6   :  { %3486 = vmatmul.mubr.bf16.vlgmr.msra.gmra.mrb[20].mxu1 %v2416_v28 }
  0xe7   :  { %3474 = vmatmul.mubr.bf16.vlgmr.msra.gmra.mrb[0].mxu0 %v2404_v4  ;;  %3489 = vmatprep.mubr.bf16.mxu1 %v2418_v23 }
  0xe8   :  { %3477 = vmatprep.mubr.bf16.mxu0 %v2406_v1 }
  0xee   :  { %3490 = vmatmul.mubr.bf16.gmra.mrb[24].mxu1 %v2420_v45 }
  0xef   :  { %3478 = vmatmul.mubr.bf16.gmra.mrb[4].mxu0 %v2408_v42 }
  0xf0   :  { %3481 = vmatprep.mubr.bf16.mxu0 %v2410_v53 }
  0xf7   :  { %3482 = vmatmul.mubr.bf16.gmra.mrb[8].mxu0 %v2412_v41 }
 0x191   :  { %v3295_v5 = vpop.f32.mrb[0].mxu1 }
 0x192   :  { %v1037_v18 = vpop.f32.mrb[1].mxu1 }
 0x193   :  { %v3296_v21 = vpop.f32.mrb[2].mxu1 }
 0x194   :  { %v1040_v24 = vpop.f32.mrb[3].mxu1 }
 0x199   :  { %v4185_v6 = vpop.f32.mrb[4].mxu1 }
 0x19a   :  { %v4187_v54 = vpop.f32.mrb[5].mxu1 }
 0x19b   :  { %v4189_v44 = vpop.f32.mrb[6].mxu1 }
 0x19c   :  { %v4191_v8 = vpop.f32.mrb[7].mxu1 }
 0x1a1   :  { %v4193_v9 = vpop.f32.mrb[8].mxu1 }
 0x1a2   :  { %v4195_v10 = vpop.f32.mrb[9].mxu1 }
 0x1a3   :  { %v4197_v11 = vpop.f32.mrb[10].mxu1 }
 0x1a4   :  { %v4199_v16 = vpop.f32.mrb[11].mxu1 }
 0x1a9   :  { %v3307_v19 = vpop.f32.mrb[12].mxu1 }
 0x1aa   :  { %v3451_v14 = vpop.f32.mrb[12].mxu0  ;;  %v1085_v33 = vpop.f32.mrb[13].mxu1 }
 0x1ab   :  { %v3521_v47 = vadd.f32 %v3451_v14, %v3307_v19  ;;  %v2328_v20 = vpop.f32.mrb[13].mxu0  ;;  %v3308_v22 = vpop.f32.mrb[14].mxu1 }
 0x1ac   :  { %v3523_v27 = vadd.f32 %v2328_v20, %v1085_v33  ;;  %v3452_v29 = vpop.f32.mrb[14].mxu0  ;;  %v1088_v30 = vpop.f32.mrb[15].mxu1 }
 0x1ad   :  { %v3525_v32 = vadd.f32 %v3452_v29, %v3308_v22  ;;  %v2331_v34 = vpop.f32.mrb[15].mxu0 }
 0x1ae   :  { %v3527_v15 = vadd.f32 %v2331_v34, %v1088_v30 }
 0x1b1   :  { %v3311_v35 = vpop.f32.mrb[16].mxu1 }
 0x1b2   :  { %v3455_v37 = vpop.f32.mrb[16].mxu0  ;;  %v1101_v25 = vpop.f32.mrb[17].mxu1 }
 0x1b3   :  { %v3529_v13 = vadd.f32 %v3455_v37, %v3311_v35  ;;  %v2344_v38 = vpop.f32.mrb[17].mxu0  ;;  %v3312_v40 = vpop.f32.mrb[18].mxu1 }
 0x1b4   :  { %v3531_v43 = vadd.f32 %v2344_v38, %v1101_v25  ;;  %v3456_v46 = vpop.f32.mrb[18].mxu0  ;;  %v1104_v39 = vpop.f32.mrb[19].mxu1 }
 0x1b5   :  { %v3533_v49 = vadd.f32 %v3456_v46, %v3312_v40  ;;  %v2347_v12 = vpop.f32.mrb[19].mxu0 }
 0x1b6   :  { %v3535_v50 = vadd.f32 %v2347_v12, %v1104_v39 }
 0x1b9   :  { %v3487_v52 = vpop.f32.mrb[20].mxu1 }
 0x1ba   :  { %v3475_v31 = vpop.f32.mrb[0].mxu0  ;;  %v3522_v55 = vadd.f32 %v3521_v47, %v3487_v52  ;;  %v2561_v57 = vpop.f32.mrb[21].mxu1 }
 0x1bb   :  { %v3509_v58 = vadd.f32 %v3475_v31, %v3295_v5  ;;  %v2513_v56 = vpop.f32.mrb[1].mxu0  ;;  %v3524_v36 = vadd.f32 %v3523_v27, %v2561_v57  ;;  %v3488_v48 = vpop.f32.mrb[22].mxu1 }
 0x1bc   :  { %v3510_v51 = vadd.f32 %v2513_v56, %v1037_v18  ;;  %v3476_v17 = vpop.f32.mrb[2].mxu0  ;;  %v3526_v61 = vadd.f32 %v3525_v32, %v3488_v48  ;;  %v2564_v62 = vpop.f32.mrb[23].mxu1  ;;  %v2633_v0 = vadd.f32 %v3522_v55, %v4204_v59 }
 0x1bd   :  { %v3511_v63 = vadd.f32 %v3476_v17, %v3296_v21  ;;  %v2516_v7 = vpop.f32.mrb[3].mxu0  ;;  %v3528_v26 = vadd.f32 %v3527_v15, %v2564_v62  ;;  %v2621_v23 = vadd.f32 %v3509_v58, %v4204_v59  ;;  %v2631_v1 = vadd.f32 %v3524_v36, %v4204_v59 }
 0x1be   :  { %v2634_v28 = vadd.f32 %v3526_v61, %v4204_v59  ;;  %v3512_v4 = vadd.f32 %v2516_v7, %v1040_v24  ;;  %v2619_v60 = vadd.f32 %v3510_v51, %v4204_v59 }
 0x1bf   :  { %v2622_v2 = vadd.f32 %v3511_v63, %v4204_v59  ;;  %v2632_v3 = vadd.f32 %v3528_v26, %v4204_v59 }
 0x1c0   :  { %v2986_v45 = vpack.c.bf16 %v2634_v28, %v2633_v0  ;;  %v2620_v42 = vadd.f32 %v3512_v4, %v4204_v59 }
 0x1c1   :  { %v2956_v53 = vpack.c.bf16 %v2622_v2, %v2621_v23  ;;  %v2981_v41 = vpack.c.bf16 %v2632_v3, %v2631_v1  ;;  %v3491_v5 = vpop.f32.mrb[24].mxu1 }
 0x1c2   :  { %3004 = vst [vmem:[#allocation7 + $0x38] sm:$0xff] %v2986_v45   ;;  %v2951_v18 = vpack.c.bf16 %v2620_v42, %v2619_v60  ;;  %v3479_v21 = vpop.f32.mrb[4].mxu0  ;;  %v3530_v24 = vadd.f32 %v3529_v13, %v3491_v5  ;;  %v2577_v19 = vpop.f32.mrb[25].mxu1 }
 0x1c3   :  { %2998 = vst [vmem:[#allocation7 + $0x8] sm:$0xff] %v2956_v53   ;;  %3003 = vst [vmem:[#allocation7 + $0x30] sm:$0xff] %v2981_v41   ;;  %v3513_v14 = vadd.f32 %v3479_v21, %v4185_v6  ;;  %v2529_v33 = vpop.f32.mrb[5].mxu0  ;;  %v3532_v47 = vadd.f32 %v3531_v43, %v2577_v19  ;;  %v3492_v20 = vpop.f32.mrb[26].mxu1 }
 0x1c4   :  { %2952 = vst [vmem:[#allocation7] sm:$0xff] %v2951_v18   ;;  %v3514_v22 = vadd.f32 %v2529_v33, %v4187_v54  ;;  %v3480_v27 = vpop.f32.mrb[6].mxu0  ;;  %v3534_v29 = vadd.f32 %v3533_v49, %v3492_v20  ;;  %v2580_v30 = vpop.f32.mrb[27].mxu1  ;;  %v2637_v35 = vadd.f32 %v3530_v24, %v4204_v59 }
 0x1c5   :  { %v3515_v32 = vadd.f32 %v3480_v27, %v4189_v44  ;;  %v2532_v34 = vpop.f32.mrb[7].mxu0  ;;  %v3536_v15 = vadd.f32 %v3535_v50, %v2580_v30  ;;  %v2625_v6 = vadd.f32 %v3513_v14, %v4204_v59  ;;  %v2635_v13 = vadd.f32 %v3532_v47, %v4204_v59 }
 0x1c6   :  { %v2638_v37 = vadd.f32 %v3534_v29, %v4204_v59  ;;  %v3516_v25 = vadd.f32 %v2532_v34, %v4191_v8  ;;  %v2623_v40 = vadd.f32 %v3514_v22, %v4204_v59 }
 0x1c7   :  { %v2626_v38 = vadd.f32 %v3515_v32, %v4204_v59  ;;  %v2636_v54 = vadd.f32 %v3536_v15, %v4204_v59 }
 0x1c8   :  { %v2996_v43 = vpack.c.bf16 %v2638_v37, %v2637_v35  ;;  %v2624_v44 = vadd.f32 %v3516_v25, %v4204_v59 }
 0x1c9   :  { %v2966_v46 = vpack.c.bf16 %v2626_v38, %v2625_v6  ;;  %v2991_v39 = vpack.c.bf16 %v2636_v54, %v2635_v13 }
 0x1ca   :  { %3006 = vst [vmem:[#allocation7 + $0x48] sm:$0xff] %v2996_v43   ;;  %v2961_v49 = vpack.c.bf16 %v2624_v44, %v2623_v40  ;;  %v3483_v12 = vpop.f32.mrb[8].mxu0 }
 0x1cb   :  { %3000 = vst [vmem:[#allocation7 + $0x18] sm:$0xff] %v2966_v46   ;;  %3005 = vst [vmem:[#allocation7 + $0x40] sm:$0xff] %v2991_v39   ;;  %v3517_v8 = vadd.f32 %v3483_v12, %v4193_v9  ;;  %v2545_v50 = vpop.f32.mrb[9].mxu0 }
 0x1cc   :  { %2999 = vst [vmem:[#allocation7 + $0x10] sm:$0xff] %v2961_v49   ;;  %v3518_v52 = vadd.f32 %v2545_v50, %v4195_v10  ;;  %v3484_v31 = vpop.f32.mrb[10].mxu0 }
 0x1cd   :  { %v3519_v55 = vadd.f32 %v3484_v31, %v4197_v11  ;;  %v2548_v57 = vpop.f32.mrb[11].mxu0  ;;  %v2629_v56 = vadd.f32 %v3517_v8, %v4204_v59 }
 0x1ce   :  { %v3520_v58 = vadd.f32 %v2548_v57, %v4199_v16  ;;  %v2627_v48 = vadd.f32 %v3518_v52, %v4204_v59 }
 0x1cf   :  { %v2630_v36 = vadd.f32 %v3519_v55, %v4204_v59 }
 0x1d0   :  { %v2628_v9 = vadd.f32 %v3520_v58, %v4204_v59 }
 0x1d1   :  { %v2976_v51 = vpack.c.bf16 %v2630_v36, %v2629_v56 }
 0x1d2   :  { %v2971_v17 = vpack.c.bf16 %v2628_v9, %v2627_v48 }
 0x1d3   :  { %3002 = vst [vmem:[#allocation7 + $0x28] sm:$0xff] %v2976_v51  }
 0x1d4   :  { %3001 = vst [vmem:[#allocation7 + $0x20] sm:$0xff] %v2971_v17  }
 0x1d5   :  { %3857 = shalt.err (!%p3854_p6)
}
 0x1d6   :  { %s3858_s16 = scalar_lea.hbm %s4252_s3, 1280 }
 0x1d7   :  { %p3859_p7 = scmp.ne.s32.totalorder %s4252_s3, %s3858_s16  ;;  %p3862_p8 = scmp.lt.u32.totalorder %s3858_s16, %s4252_s3 }
 0x1d9   :  { %p3864_p9 = pnand %p3862_p8, %p3859_p7 }
 0x1db   :  { %3867 = shalt.err (!%p3864_p9)
}
 0x1dc   :  { %2750 = dma.vmem_to_hbm [thread:$0]  %s2745_s12, 1280, %s4252_s3, [#allocation6], %s3875_s22, %s3875_s22, %s3876_s23  }
 0x1dd   :  { %3872 = dma.done.wait [#allocation6], 1280  }
 0x1de   :  { %3873 = vsyncadd [#allocation6], 4294966016 }
 0x1df   :  { %2754 = vsyncpa [#allocation5], 1 }
 0x1e0   :  { %2755 = vsyncpa [#allocation6], 1 }
 0x1e1   :  { %2756 = vsyncmov [#allocation3] }
 0x1e4   :  { %s2757_s25 = vpop.sfrf %2756 }
 0x1e5   :  { %p2926_p10 = scmp.ne.s32.totalorder %s2757_s25, 0 }
 0x1e7   :  { %2761 = shalt.err (%p2926_p10)  }
 0x1e8   :  { %2763 = vsyncmov [#allocation3 + $0x1] }
 0x1eb   :  { %s2764_s26 = vpop.sfrf %2763 }
 0x1ec   :  { %p2927_p11 = scmp.ne.s32.totalorder %s2764_s26, 0 }
 0x1ee   :  { %2768 = shalt.err (%p2927_p11)  }

</bundles_post_ra>
